<compile_context>
chip_gen: v5e
topology: v5e:2x2
jax: 0.10.0
libtpu: 0.0.40
codegen_flags: <defaults>
</compile_context>

<pallas_src>
import math

import jax
import jax.numpy as jnp
from jax.experimental import pallas as pl
from jax.experimental.pallas import tpu as pltpu


def _round_up(x, m):
    return ((x + m - 1) // m) * m


def _pad_to(x, rows, cols):
    out = jnp.zeros((rows, cols), x.dtype)
    return out.at[: x.shape[0], : x.shape[1]].set(x)


def _vmem_limit_bytes():
    """3/4 of physical VMEM (≈48 MiB on v7x, ≈96 MiB on v5e/v6e)."""
    try:
        cap = pltpu.get_tpu_info().vmem_capacity_bytes
    except Exception:  # pragma: no cover - conservative fallback
        cap = 64 * 1024 * 1024
    return int(min(cap * 3 // 4, 100 * 1024 * 1024))


def _pick_tiles(n_pad):
    """Contraction tile tk (biggest divisor) and row tile tm (>=2 tiles if possible)."""
    tk = next((c for c in (512, 256) if n_pad % c == 0), 128)
    tm = next((c for c in (512, 256) if n_pad % c == 0 and n_pad // c >= 2), 128)
    return tm, tk


# -----------------------------------------------------------------------------
# Pallas kernels
# -----------------------------------------------------------------------------
def _make_pass1_kernel(h_pad):
    """Pass 1: accx = A @ x, acch = A @ h  ->  z, r*h and the xh pre-activation."""

    def kernel(a_ref, x_ref, hcol_ref, hrow_ref, wx_ref, wh_ref, b3_ref,
               z_ref, rh_ref, gxh_ref, accx_ref, acch_ref):
        k = pl.program_id(1)

        @pl.when(k == 0)
        def _init():
            accx_ref[...] = jnp.zeros_like(accx_ref)
            acch_ref[...] = jnp.zeros_like(acch_ref)

        # bf16 x bf16 -> f32 accumulation on the MXU.
        accx_ref[...] += jnp.dot(a_ref[...], x_ref[...],
                                 preferred_element_type=jnp.float32)
        acch_ref[...] += jnp.dot(a_ref[...], hcol_ref[...],
                                 preferred_element_type=jnp.float32)

        @pl.when(k == pl.num_programs(1) - 1)
        def _finalize():
            # One lane-dense (tm, 3*h_pad) epilogue per accumulator; bf16
            # operands, f32 accumulation (no f32xf32 MXU emulation).
            g = (jnp.dot(accx_ref[...].astype(jnp.bfloat16), wx_ref[...],
                         preferred_element_type=jnp.float32)
                 + jnp.dot(acch_ref[...].astype(jnp.bfloat16), wh_ref[...],
                           preferred_element_type=jnp.float32)
                 + b3_ref[...])
            z = jax.nn.sigmoid(g[:, :h_pad])
            r = jax.nn.sigmoid(g[:, h_pad:2 * h_pad])
            z_ref[...] = z.astype(z_ref.dtype)
            rh_ref[...] = (r * hrow_ref[...].astype(jnp.float32)).astype(rh_ref.dtype)
            gxh_ref[...] = g[:, 2 * h_pad:]

    return kernel


def _pass2_kernel(a_ref, rh_ref, z_ref, gxh_ref, hrow_ref, whh_ref, bhh_ref,
                  hout_ref, acc_ref):
    """Pass 2: acc = A @ (r*h);  h_tilde = tanh(gxh + acc Whh + bhh);  blend."""
    k = pl.program_id(1)

    @pl.when(k == 0)
    def _init():
        acc_ref[...] = jnp.zeros_like(acc_ref)

    acc_ref[...] += jnp.dot(a_ref[...], rh_ref[...],
                            preferred_element_type=jnp.float32)

    @pl.when(k == pl.num_programs(1) - 1)
    def _finalize():
        # Note: result width is h_pad (128 for small hidden sizes), so half
        # the 256-wide MXU is idle on v6e/v7x for this matmul; acceptable
        # since pass 2 is HBM-bound for these shapes.
        h_tilde = jnp.tanh(
            gxh_ref[...]
            + jnp.dot(acc_ref[...].astype(jnp.bfloat16), whh_ref[...],
                      preferred_element_type=jnp.float32)
            + bhh_ref[...])
        z = z_ref[...].astype(jnp.float32)
        h = hrow_ref[...].astype(jnp.float32)
        hout_ref[...] = (z * h + (1.0 - z) * h_tilde).astype(hout_ref.dtype)


# -----------------------------------------------------------------------------
# One graph-GRU layer: two tiled pallas_calls (two A streaming passes)
# -----------------------------------------------------------------------------
def gru_sage_layer(a_bf, x_bf, h_bf, wx, wh, b3, whh, bhh, *, tm, tk,
                   h_pad, vmem_limit):
    n_pad = a_bf.shape[0]
    d_pad = x_bf.shape[1]
    grid = (n_pad // tm, n_pad // tk)

    cparams = pltpu.CompilerParams(
        dimension_semantics=("parallel", "arbitrary"),
        vmem_limit_bytes=vmem_limit)

    # ---- pass 1: A @ x, A @ h -> z, r*h, xh-gate pre-activation -------------
    cost1 = pl.CostEstimate(
        flops=int(2 * n_pad * n_pad * (d_pad + h_pad)
                  + 2 * n_pad * (d_pad + h_pad) * 3 * h_pad),
        transcendentals=int(2 * n_pad * h_pad),
        bytes_accessed=int(2 * n_pad * n_pad
                           + 2 * (n_pad // tm) * n_pad * (d_pad + h_pad)
                           + 12 * n_pad * h_pad))
    z, rh, gxh = pl.pallas_call(
        _make_pass1_kernel(h_pad),
        out_shape=(jax.ShapeDtypeStruct((n_pad, h_pad), jnp.bfloat16),   # z
                   jax.ShapeDtypeStruct((n_pad, h_pad), jnp.bfloat16),   # r*h
                   jax.ShapeDtypeStruct((n_pad, h_pad), jnp.float32)),   # gxh
        grid_spec=pltpu.PrefetchScalarGridSpec(
            num_scalar_prefetch=0,
            grid=grid,
            in_specs=[
                pl.BlockSpec((tm, tk), lambda i, k: (i, k)),            # A
                pl.BlockSpec((tk, d_pad), lambda i, k: (k, 0)),         # x rows (contraction)
                pl.BlockSpec((tk, h_pad), lambda i, k: (k, 0)),         # h rows (contraction)
                pl.BlockSpec((tm, h_pad), lambda i, k: (i, 0)),         # h rows (output tile)
                pl.BlockSpec((d_pad, 3 * h_pad), lambda i, k: (0, 0)),  # Wx cat (resident)
                pl.BlockSpec((h_pad, 3 * h_pad), lambda i, k: (0, 0)),  # Wh cat (resident)
                pl.BlockSpec((1, 3 * h_pad), lambda i, k: (0, 0)),      # b3
            ],
            out_specs=(
                pl.BlockSpec((tm, h_pad), lambda i, k: (i, 0)),         # z
                pl.BlockSpec((tm, h_pad), lambda i, k: (i, 0)),         # r*h
                pl.BlockSpec((tm, h_pad), lambda i, k: (i, 0)),         # gxh
            ),
            scratch_shapes=[pltpu.VMEM((tm, d_pad), jnp.float32),
                            pltpu.VMEM((tm, h_pad), jnp.float32)]),
        compiler_params=cparams,
        cost_estimate=cost1,
    )(a_bf, x_bf, h_bf, h_bf, wx, wh, b3)

    # ---- pass 2: A @ (r*h) -> h_out ----------------------------------------
    cost2 = pl.CostEstimate(
        flops=int(2 * n_pad * n_pad * h_pad + 2 * n_pad * h_pad * h_pad),
        transcendentals=int(n_pad * h_pad),
        bytes_accessed=int(2 * n_pad * n_pad
                           + 2 * (n_pad // tm) * n_pad * h_pad
                           + 14 * n_pad * h_pad))
    h_out = pl.pallas_call(
        _pass2_kernel,
        out_shape=jax.ShapeDtypeStruct((n_pad, h_pad), jnp.bfloat16),
        grid_spec=pltpu.PrefetchScalarGridSpec(
            num_scalar_prefetch=0,
            grid=grid,
            in_specs=[
                pl.BlockSpec((tm, tk), lambda i, k: (i, k)),            # A
                pl.BlockSpec((tk, h_pad), lambda i, k: (k, 0)),         # r*h
                pl.BlockSpec((tm, h_pad), lambda i, k: (i, 0)),         # z
                pl.BlockSpec((tm, h_pad), lambda i, k: (i, 0)),         # gxh
                pl.BlockSpec((tm, h_pad), lambda i, k: (i, 0)),         # h rows
                pl.BlockSpec((h_pad, h_pad), lambda i, k: (0, 0)),      # Whh (resident)
                pl.BlockSpec((1, h_pad), lambda i, k: (0, 0)),          # bhh
            ],
            out_specs=pl.BlockSpec((tm, h_pad), lambda i, k: (i, 0)),
            scratch_shapes=[pltpu.VMEM((tm, h_pad), jnp.float32)]),
        compiler_params=cparams,
        cost_estimate=cost2,
    )(a_bf, rh, z, gxh, h_bf, whh, bhh)
    return h_out


# -----------------------------------------------------------------------------
# Glue: graph preprocessing, parameter init / packing, layer loop
# -----------------------------------------------------------------------------
def build_mean_adj(edge_index, num_nodes):
    """remove_self_loops + add_self_loops + scatter_mean normalization matrix.

    Node `row` aggregates from node `col`, matching
    scatter_mean(out[col], row) in the reference SAGEConv.  Duplicate edges are
    counted with multiplicity (same as scatter_mean).
    """
    row, col = edge_index[0], edge_index[1]
    keep = row != col                                   # remove self loops
    row = jnp.where(keep, row, num_nodes)               # park removed edges
    col = jnp.where(keep, col, num_nodes)               # in a dummy slot
    loop = jnp.arange(num_nodes, dtype=row.dtype)       # add self loops
    row = jnp.concatenate([row, loop])
    col = jnp.concatenate([col, loop])
    A = jnp.zeros((num_nodes + 1, num_nodes + 1), jnp.float32)
    A = A.at[row, col].add(1.0)[:num_nodes, :num_nodes]
    deg = A.sum(axis=1, keepdims=True)                  # >= 1 (self loops)
    return A / deg


def init_sage_params(key, in_channels, out_channels):
    """SAGEConv reset_parameters: uniform(-1/sqrt(in), 1/sqrt(in)) for W, b."""
    stdv = 1.0 / math.sqrt(in_channels)
    kw, kb = jax.random.split(key)
    W = jax.random.uniform(kw, (in_channels, out_channels), jnp.float32,
                           minval=-stdv, maxval=stdv)
    b = jax.random.uniform(kb, (1, out_channels), jnp.float32,
                           minval=-stdv, maxval=stdv)
    return W, b


def init_graph_gru_sage(key, input_size, hidden_size, n_layer):
    layers = []
    for i in range(n_layer):
        din = input_size if i == 0 else hidden_size
        keys = jax.random.split(jax.random.fold_in(key, i), 6)
        wxz, bxz = init_sage_params(keys[0], din, hidden_size)
        whz, bhz = init_sage_params(keys[1], hidden_size, hidden_size)
        wxr, bxr = init_sage_params(keys[2], din, hidden_size)
        whr, bhr = init_sage_params(keys[3], hidden_size, hidden_size)
        wxh, bxh = init_sage_params(keys[4], din, hidden_size)
        whh, bhh = init_sage_params(keys[5], hidden_size, hidden_size)
        layers.append((wxz, whz, wxr, whr, wxh, whh,
                       bxz, bhz, bxr, bhr, bxh, bhh))
    return layers


def pack_layer_params(params, d_pad, h_pad):
    """Concatenate + zero-pad gate weights/biases; weights in bf16 for the MXU."""
    (wxz, whz, wxr, whr, wxh, whh,
     bxz, bhz, bxr, bhr, bxh, bhh) = params
    wx = jnp.concatenate([_pad_to(wxz, d_pad, h_pad),
                          _pad_to(wxr, d_pad, h_pad),
                          _pad_to(wxh, d_pad, h_pad)], axis=1)   # (d_pad, 3h)
    wh = jnp.concatenate([_pad_to(whz, h_pad, h_pad),
                          _pad_to(whr, h_pad, h_pad),
                          jnp.zeros((h_pad, h_pad), jnp.float32)], axis=1)
    # Bias folding A@(fW+b) == (A@f)W + b is exact because rows of A sum to 1
    # (approximate to ~2^-9 once A is bf16 — inside the stated tolerance).
    b3 = jnp.concatenate([_pad_to(bxz + bhz, 1, h_pad),
                          _pad_to(bxr + bhr, 1, h_pad),
                          _pad_to(bxh, 1, h_pad)], axis=1)        # (1, 3h)
    whh_p = _pad_to(whh, h_pad, h_pad)
    bhh_p = _pad_to(bhh, 1, h_pad)
    return (wx.astype(jnp.bfloat16), wh.astype(jnp.bfloat16), b3,
            whh_p.astype(jnp.bfloat16), bhh_p)


def graph_gru_sage_forward(inp, edge_index, h, layer_params):
    """Matches graph_gru_sage.forward: returns (out, h_out)."""
    n, din = inp.shape
    n_layer, _, hid = h.shape

    h_pad = _round_up(hid, 128)
    d_pad0 = _round_up(din, 128)

    # Node/contraction tiling.  Pad the node count to a 256 multiple (when it
    # exceeds one 128 tile) so the tile search never falls back to the slow
    # 128-everywhere case; tm keeps >= 2 row tiles when possible so both
    # TensorCores are used on v7x.
    n_pad = _round_up(n, 128)
    if n_pad > 128:
        n_pad = _round_up(n_pad, 256)
    tm, tk = _pick_tiles(n_pad)
    vmem_limit = _vmem_limit_bytes()

    # Dense row-normalized mean-aggregation matrix (incl. self loops), bf16.
    a = build_mean_adj(edge_index, n)
    a_bf = _pad_to(a, n_pad, n_pad).astype(jnp.bfloat16)

    x_cur = _pad_to(inp.astype(jnp.float32), n_pad, d_pad0).astype(jnp.bfloat16)
    h_padded = jnp.zeros((n_layer, n_pad, h_pad), jnp.float32)
    h_padded = h_padded.at[:, :n, :hid].set(h.astype(jnp.float32))
    h_bf = h_padded.astype(jnp.bfloat16)

    outs = []
    for i, params in enumerate(layer_params):
        d_pad_i = x_cur.shape[1]
        wx, wh, b3, whh_p, bhh_p = pack_layer_params(params, d_pad_i, h_pad)
        h_out_i = gru_sage_layer(a_bf, x_cur, h_bf[i], wx, wh, b3, whh_p,
                                 bhh_p, tm=tm, tk=tk, h_pad=h_pad,
                                 vmem_limit=vmem_limit)
        outs.append(h_out_i)
        x_cur = h_out_i                      # bf16 input to the next layer
    h_out = jnp.stack(outs, axis=0)[:, :n, :hid].astype(jnp.float32)
    return h_out, h_out


# -----------------------------------------------------------------------------
# Pure-JAX reference (f32, un-reassociated) for a correctness sanity check
# -----------------------------------------------------------------------------
def _ref_forward(inp, edge_index, h, layer_params):
    num_nodes = inp.shape[0]
    A = build_mean_adj(edge_index, num_nodes)

    def sage(feat, W, b):
        return A @ (feat @ W + b)

    outs = []
    x = inp
    for i, p in enumerate(layer_params):
        wxz, whz, wxr, whr, wxh, whh, bxz, bhz, bxr, bhr, bxh, bhh = p
        hi = h[i]
        z = jax.nn.sigmoid(sage(x, wxz, bxz) + sage(hi, whz, bhz))
        r = jax.nn.sigmoid(sage(x, wxr, bxr) + sage(hi, whr, bhr))
        h_tilde = jnp.tanh(sage(x, wxh, bxh) + sage(r * hi, whh, bhh))
        ho = z * hi + (1.0 - z) * h_tilde
        outs.append(ho)
        x = ho
    h_out = jnp.stack(outs, axis=0)
    return h_out, h_out


# -----------------------------------------------------------------------------
if __name__ == "__main__":
    key = jax.random.PRNGKey(0)

    num_nodes = 16
    input_size = 8
    hidden_size = 32
    n_layer = 2
    num_edges = 40

    k_inp, k_h, k_src, k_dst, k_par = jax.random.split(key, 5)
    inp = jax.random.normal(k_inp, (num_nodes, input_size), jnp.float32)
    h0 = jax.random.normal(k_h, (n_layer, num_nodes, hidden_size), jnp.float32)
    edge_index = jnp.stack([
        jax.random.randint(k_src, (num_edges,), 0, num_nodes, jnp.int32),
        jax.random.randint(k_dst, (num_edges,), 0, num_nodes, jnp.int32),
    ], axis=0)

    layer_params = init_graph_gru_sage(k_par, input_size, hidden_size, n_layer)

    fwd = jax.jit(graph_gru_sage_forward)
    out, h_out = fwd(inp, edge_index, h0, layer_params)
    out = jax.block_until_ready(out)
    h_out = jax.block_until_ready(h_out)

    # Sanity check against the pure-JAX f32 reference (kernel streams A and
    # features in bf16 and keeps bf16 intermediates, so a loose tolerance is
    # expected).
    ref_out, _ = _ref_forward(inp, edge_index, h0, layer_params)
    assert out.shape == (n_layer, num_nodes, hidden_size)
    max_err = float(jnp.max(jnp.abs(out - ref_out)))
    assert jnp.allclose(out, ref_out, atol=5e-2, rtol=5e-2), max_err

    print("KERNEL_OK")
</pallas_src>

<mosaic_0001>
module attributes {stable_mosaic.version = 11 : i64} {
  func.func @kernel(%arg0: i32, %arg1: i32, %arg2: memref<128x128xbf16, #tpu.memory_space<vmem>>, %arg3: memref<128x128xbf16, #tpu.memory_space<vmem>>, %arg4: memref<128x128xbf16, #tpu.memory_space<vmem>>, %arg5: memref<128x128xbf16, #tpu.memory_space<vmem>>, %arg6: memref<128x384xbf16, #tpu.memory_space<vmem>>, %arg7: memref<128x384xbf16, #tpu.memory_space<vmem>>, %arg8: memref<1x384xf32, #tpu.memory_space<vmem>>, %arg9: memref<128x128xbf16, #tpu.memory_space<vmem>>, %arg10: memref<128x128xbf16, #tpu.memory_space<vmem>>, %arg11: memref<128x128xf32, #tpu.memory_space<vmem>>, %arg12: memref<128x128xf32, #tpu.memory_space<vmem>>, %arg13: memref<128x128xf32, #tpu.memory_space<vmem>>) attributes {dimension_semantics = [#tpu.dimension_semantics<parallel>, #tpu.dimension_semantics<arbitrary>], iteration_bounds = array<i64: 1, 1>, scalar_prefetch = 0 : i64, scratch_operands = 2 : i64, tpu.core_type = #tpu.core_type<tc>, window_params = [{transform_indices = @transform_0, window_bounds = array<i64: 128, 128>}, {transform_indices = @transform_1, window_bounds = array<i64: 128, 128>}, {transform_indices = @transform_2, window_bounds = array<i64: 128, 128>}, {transform_indices = @transform_3, window_bounds = array<i64: 128, 128>}, {pipeline_mode = #tpu.pipeline_mode<synchronous>, transform_indices = @transform_4, window_bounds = array<i64: 128, 384>}, {pipeline_mode = #tpu.pipeline_mode<synchronous>, transform_indices = @transform_5, window_bounds = array<i64: 128, 384>}, {pipeline_mode = #tpu.pipeline_mode<synchronous>, transform_indices = @transform_6, window_bounds = array<i64: 1, 384>}, {transform_indices = @transform_7, window_bounds = array<i64: 128, 128>}, {transform_indices = @transform_8, window_bounds = array<i64: 128, 128>}, {transform_indices = @transform_9, window_bounds = array<i64: 128, 128>}]} {
    %c0_i32 = arith.constant 0 : i32
    %0 = arith.cmpi eq, %arg1, %c0_i32 : i32
    %1 = arith.extui %0 : i1 to i32
    %c0_i32_0 = arith.constant 0 : i32
    %2 = arith.cmpi ne, %1, %c0_i32_0 : i32
    scf.if %2 {
      %cst_19 = arith.constant 0.000000e+00 : f32
      %18 = vector.broadcast %cst_19 : f32 to vector<128x128xf32>
      %c0_20 = arith.constant 0 : index
      %c0_21 = arith.constant 0 : index
      %19 = vector.load %arg12[%c0_20, %c0_21] : memref<128x128xf32, #tpu.memory_space<vmem>>, vector<128x128xf32>
      tpu.vector_store %arg12[%c0_20, %c0_21], %18 {strides = array<i32>} : memref<128x128xf32, #tpu.memory_space<vmem>>, vector<128x128xf32>,
      %cst_22 = arith.constant 0.000000e+00 : f32
      %20 = vector.broadcast %cst_22 : f32 to vector<128x128xf32>
      %c0_23 = arith.constant 0 : index
      %c0_24 = arith.constant 0 : index
      %21 = vector.load %arg13[%c0_23, %c0_24] : memref<128x128xf32, #tpu.memory_space<vmem>>, vector<128x128xf32>
      tpu.vector_store %arg13[%c0_23, %c0_24], %20 {strides = array<i32>} : memref<128x128xf32, #tpu.memory_space<vmem>>, vector<128x128xf32>,
    } else {
    }
    %c0 = arith.constant 0 : index
    %c0_1 = arith.constant 0 : index
    %3 = vector.load %arg12[%c0, %c0_1] : memref<128x128xf32, #tpu.memory_space<vmem>>, vector<128x128xf32>
    %c0_2 = arith.constant 0 : index
    %c0_3 = arith.constant 0 : index
    %4 = vector.load %arg2[%c0_2, %c0_3] : memref<128x128xbf16, #tpu.memory_space<vmem>>, vector<128x128xbf16>
    %c0_4 = arith.constant 0 : index
    %c0_5 = arith.constant 0 : index
    %5 = vector.load %arg3[%c0_4, %c0_5] : memref<128x128xbf16, #tpu.memory_space<vmem>>, vector<128x128xbf16>
    %cst = arith.constant dense<0.000000e+00> : vector<128x128xf32>
    %6 = tpu.matmul %4, %5, %cst {dimension_numbers = #tpu.dot_dimension_numbers<[1], [0], [0], [1], [0, 0, 1, 1], [], []>} : vector<128x128xbf16>, vector<128x128xbf16>, vector<128x128xf32> -> vector<128x128xf32>
    %7 = arith.addf %3, %6 : vector<128x128xf32>
    %c0_6 = arith.constant 0 : index
    %c0_7 = arith.constant 0 : index
    %8 = vector.load %arg12[%c0_6, %c0_7] : memref<128x128xf32, #tpu.memory_space<vmem>>, vector<128x128xf32>
    tpu.vector_store %arg12[%c0_6, %c0_7], %7 {strides = array<i32>} : memref<128x128xf32, #tpu.memory_space<vmem>>, vector<128x128xf32>,
    %c0_8 = arith.constant 0 : index
    %c0_9 = arith.constant 0 : index
    %9 = vector.load %arg13[%c0_8, %c0_9] : memref<128x128xf32, #tpu.memory_space<vmem>>, vector<128x128xf32>
    %c0_10 = arith.constant 0 : index
    %c0_11 = arith.constant 0 : index
    %10 = vector.load %arg2[%c0_10, %c0_11] : memref<128x128xbf16, #tpu.memory_space<vmem>>, vector<128x128xbf16>
    %c0_12 = arith.constant 0 : index
    %c0_13 = arith.constant 0 : index
    %11 = vector.load %arg4[%c0_12, %c0_13] : memref<128x128xbf16, #tpu.memory_space<vmem>>, vector<128x128xbf16>
    %cst_14 = arith.constant dense<0.000000e+00> : vector<128x128xf32>
    %12 = tpu.matmul %10, %11, %cst_14 {dimension_numbers = #tpu.dot_dimension_numbers<[1], [0], [0], [1], [0, 0, 1, 1], [], []>} : vector<128x128xbf16>, vector<128x128xbf16>, vector<128x128xf32> -> vector<128x128xf32>
    %13 = arith.addf %9, %12 : vector<128x128xf32>
    %c0_15 = arith.constant 0 : index
    %c0_16 = arith.constant 0 : index
    %14 = vector.load %arg13[%c0_15, %c0_16] : memref<128x128xf32, #tpu.memory_space<vmem>>, vector<128x128xf32>
    tpu.vector_store %arg13[%c0_15, %c0_16], %13 {strides = array<i32>} : memref<128x128xf32, #tpu.memory_space<vmem>>, vector<128x128xf32>,
    %c0_i32_17 = arith.constant 0 : i32
    %15 = arith.cmpi eq, %arg1, %c0_i32_17 : i32
    %16 = arith.extui %15 : i1 to i32
    %c0_i32_18 = arith.constant 0 : i32
    %17 = arith.cmpi ne, %16, %c0_i32_18 : i32
    scf.if %17 {
      %c0_19 = arith.constant 0 : index
      %c0_20 = arith.constant 0 : index
      %18 = vector.load %arg12[%c0_19, %c0_20] : memref<128x128xf32, #tpu.memory_space<vmem>>, vector<128x128xf32>
      %19 = arith.truncf %18 : vector<128x128xf32> to vector<128x128xbf16>
      %c0_21 = arith.constant 0 : index
      %c0_22 = arith.constant 0 : index
      %20 = vector.load %arg6[%c0_21, %c0_22] : memref<128x384xbf16, #tpu.memory_space<vmem>>, vector<128x384xbf16>
      %cst_23 = arith.constant dense<0.000000e+00> : vector<128x384xf32>
      %21 = tpu.matmul %19, %20, %cst_23 {dimension_numbers = #tpu.dot_dimension_numbers<[1], [0], [0], [1], [0, 0, 1, 1], [], []>} : vector<128x128xbf16>, vector<128x384xbf16>, vector<128x384xf32> -> vector<128x384xf32>
      %c0_24 = arith.constant 0 : index
      %c0_25 = arith.constant 0 : index
      %22 = vector.load %arg13[%c0_24, %c0_25] : memref<128x128xf32, #tpu.memory_space<vmem>>, vector<128x128xf32>
      %23 = arith.truncf %22 : vector<128x128xf32> to vector<128x128xbf16>
      %c0_26 = arith.constant 0 : index
      %c0_27 = arith.constant 0 : index
      %24 = vector.load %arg7[%c0_26, %c0_27] : memref<128x384xbf16, #tpu.memory_space<vmem>>, vector<128x384xbf16>
      %cst_28 = arith.constant dense<0.000000e+00> : vector<128x384xf32>
      %25 = tpu.matmul %23, %24, %cst_28 {dimension_numbers = #tpu.dot_dimension_numbers<[1], [0], [0], [1], [0, 0, 1, 1], [], []>} : vector<128x128xbf16>, vector<128x384xbf16>, vector<128x384xf32> -> vector<128x384xf32>
      %26 = arith.addf %21, %25 : vector<128x384xf32>
      %c0_29 = arith.constant 0 : index
      %c0_30 = arith.constant 0 : index
      %27 = vector.load %arg8[%c0_29, %c0_30] : memref<1x384xf32, #tpu.memory_space<vmem>>, vector<1x384xf32>
      %28 = vector.broadcast %27 : vector<1x384xf32> to vector<128x384xf32>
      %29 = arith.addf %26, %28 : vector<128x384xf32>
      %30 = vector.extract_strided_slice %29 {offsets = [0, 0], sizes = [128, 128], strides = [1, 1]} : vector<128x384xf32> to vector<128x128xf32>
      %31 = arith.negf %30 : vector<128x128xf32>
      %32 = math.exp %31 : vector<128x128xf32>
      %cst_31 = arith.constant 1.000000e+00 : f32
      %33 = vector.broadcast %cst_31 : f32 to vector<128x128xf32>
      %34 = arith.addf %33, %32 : vector<128x128xf32>
      %35 = arith.divf %33, %34 : vector<128x128xf32>
      %36 = vector.extract_strided_slice %29 {offsets = [0, 128], sizes = [128, 128], strides = [1, 1]} : vector<128x384xf32> to vector<128x128xf32>
      %37 = arith.negf %36 : vector<128x128xf32>
      %38 = math.exp %37 : vector<128x128xf32>
      %cst_32 = arith.constant 1.000000e+00 : f32
      %39 = vector.broadcast %cst_32 : f32 to vector<128x128xf32>
      %40 = arith.addf %39, %38 : vector<128x128xf32>
      %41 = arith.divf %39, %40 : vector<128x128xf32>
      %42 = arith.truncf %35 : vector<128x128xf32> to vector<128x128xbf16>
      %c0_33 = arith.constant 0 : index
      %c0_34 = arith.constant 0 : index
      %43 = vector.load %arg9[%c0_33, %c0_34] : memref<128x128xbf16, #tpu.memory_space<vmem>>, vector<128x128xbf16>
      tpu.vector_store %arg9[%c0_33, %c0_34], %42 {strides = array<i32>} : memref<128x128xbf16, #tpu.memory_space<vmem>>, vector<128x128xbf16>,
      %c0_35 = arith.constant 0 : index
      %c0_36 = arith.constant 0 : index
      %44 = vector.load %arg5[%c0_35, %c0_36] : memref<128x128xbf16, #tpu.memory_space<vmem>>, vector<128x128xbf16>
      %45 = arith.extf %44 : vector<128x128xbf16> to vector<128x128xf32>
      %46 = arith.mulf %41, %45 : vector<128x128xf32>
      %47 = arith.truncf %46 : vector<128x128xf32> to vector<128x128xbf16>
      %c0_37 = arith.constant 0 : index
      %c0_38 = arith.constant 0 : index
      %48 = vector.load %arg10[%c0_37, %c0_38] : memref<128x128xbf16, #tpu.memory_space<vmem>>, vector<128x128xbf16>
      tpu.vector_store %arg10[%c0_37, %c0_38], %47 {strides = array<i32>} : memref<128x128xbf16, #tpu.memory_space<vmem>>, vector<128x128xbf16>,
      %49 = vector.extract_strided_slice %29 {offsets = [0, 256], sizes = [128, 128], strides = [1, 1]} : vector<128x384xf32> to vector<128x128xf32>
      %c0_39 = arith.constant 0 : index
      %c0_40 = arith.constant 0 : index
      %50 = vector.load %arg11[%c0_39, %c0_40] : memref<128x128xf32, #tpu.memory_space<vmem>>, vector<128x128xf32>
      tpu.vector_store %arg11[%c0_39, %c0_40], %49 {strides = array<i32>} : memref<128x128xf32, #tpu.memory_space<vmem>>, vector<128x128xf32>,
    } else {
    }
    return
  }
  func.func @transform_0(%arg0: i32, %arg1: i32) -> (i32, i32) {
    %c0_i32 = arith.constant 0 : i32
    return %arg0, %arg1 : i32, i32
  }
  func.func @transform_1(%arg0: i32, %arg1: i32) -> (i32, i32) {
    %c0_i32 = arith.constant 0 : i32
    %c0_i32_0 = arith.constant 0 : i32
    return %arg1, %c0_i32 : i32, i32
  }
  func.func @transform_2(%arg0: i32, %arg1: i32) -> (i32, i32) {
    %c0_i32 = arith.constant 0 : i32
    %c0_i32_0 = arith.constant 0 : i32
    return %arg1, %c0_i32 : i32, i32
  }
  func.func @transform_3(%arg0: i32, %arg1: i32) -> (i32, i32) {
    %c0_i32 = arith.constant 0 : i32
    %c0_i32_0 = arith.constant 0 : i32
    return %arg0, %c0_i32 : i32, i32
  }
  func.func @transform_4(%arg0: i32, %arg1: i32) -> (i32, i32) {
    %c0_i32 = arith.constant 0 : i32
    %c0_i32_0 = arith.constant 0 : i32
    %c0_i32_1 = arith.constant 0 : i32
    return %c0_i32, %c0_i32_0 : i32, i32
  }
  func.func @transform_5(%arg0: i32, %arg1: i32) -> (i32, i32) {
    %c0_i32 = arith.constant 0 : i32
    %c0_i32_0 = arith.constant 0 : i32
    %c0_i32_1 = arith.constant 0 : i32
    return %c0_i32, %c0_i32_0 : i32, i32
  }
  func.func @transform_6(%arg0: i32, %arg1: i32) -> (i32, i32) {
    %c0_i32 = arith.constant 0 : i32
    %c0_i32_0 = arith.constant 0 : i32
    %c0_i32_1 = arith.constant 0 : i32
    return %c0_i32, %c0_i32_0 : i32, i32
  }
  func.func @transform_7(%arg0: i32, %arg1: i32) -> (i32, i32) {
    %c0_i32 = arith.constant 0 : i32
    %c0_i32_0 = arith.constant 0 : i32
    return %arg0, %c0_i32 : i32, i32
  }
  func.func @transform_8(%arg0: i32, %arg1: i32) -> (i32, i32) {
    %c0_i32 = arith.constant 0 : i32
    %c0_i32_0 = arith.constant 0 : i32
    return %arg0, %c0_i32 : i32, i32
  }
  func.func @transform_9(%arg0: i32, %arg1: i32) -> (i32, i32) {
    %c0_i32 = arith.constant 0 : i32
    %c0_i32_0 = arith.constant 0 : i32
    return %arg0, %c0_i32 : i32, i32
  }
}

module attributes {stable_mosaic.version = 11 : i64} {
  func.func @_pass2_kernel(%arg0: i32, %arg1: i32, %arg2: memref<128x128xbf16, #tpu.memory_space<vmem>>, %arg3: memref<128x128xbf16, #tpu.memory_space<vmem>>, %arg4: memref<128x128xbf16, #tpu.memory_space<vmem>>, %arg5: memref<128x128xf32, #tpu.memory_space<vmem>>, %arg6: memref<128x128xbf16, #tpu.memory_space<vmem>>, %arg7: memref<128x128xbf16, #tpu.memory_space<vmem>>, %arg8: memref<1x128xf32, #tpu.memory_space<vmem>>, %arg9: memref<128x128xbf16, #tpu.memory_space<vmem>>, %arg10: memref<128x128xf32, #tpu.memory_space<vmem>>) attributes {dimension_semantics = [#tpu.dimension_semantics<parallel>, #tpu.dimension_semantics<arbitrary>], iteration_bounds = array<i64: 1, 1>, scalar_prefetch = 0 : i64, scratch_operands = 1 : i64, tpu.core_type = #tpu.core_type<tc>, window_params = [{transform_indices = @transform_0, window_bounds = array<i64: 128, 128>}, {transform_indices = @transform_1, window_bounds = array<i64: 128, 128>}, {transform_indices = @transform_2, window_bounds = array<i64: 128, 128>}, {transform_indices = @transform_3, window_bounds = array<i64: 128, 128>}, {transform_indices = @transform_4, window_bounds = array<i64: 128, 128>}, {pipeline_mode = #tpu.pipeline_mode<synchronous>, transform_indices = @transform_5, window_bounds = array<i64: 128, 128>}, {pipeline_mode = #tpu.pipeline_mode<synchronous>, transform_indices = @transform_6, window_bounds = array<i64: 1, 128>}, {transform_indices = @transform_7, window_bounds = array<i64: 128, 128>}]} {
    %c0_i32 = arith.constant 0 : i32
    %0 = arith.cmpi eq, %arg1, %c0_i32 : i32
    %1 = arith.extui %0 : i1 to i32
    %c0_i32_0 = arith.constant 0 : i32
    %2 = arith.cmpi ne, %1, %c0_i32_0 : i32
    scf.if %2 {
      %cst_10 = arith.constant 0.000000e+00 : f32
      %12 = vector.broadcast %cst_10 : f32 to vector<128x128xf32>
      %c0_11 = arith.constant 0 : index
      %c0_12 = arith.constant 0 : index
      %13 = vector.load %arg10[%c0_11, %c0_12] : memref<128x128xf32, #tpu.memory_space<vmem>>, vector<128x128xf32>
      tpu.vector_store %arg10[%c0_11, %c0_12], %12 {strides = array<i32>} : memref<128x128xf32, #tpu.memory_space<vmem>>, vector<128x128xf32>,
    } else {
    }
    %c0 = arith.constant 0 : index
    %c0_1 = arith.constant 0 : index
    %3 = vector.load %arg10[%c0, %c0_1] : memref<128x128xf32, #tpu.memory_space<vmem>>, vector<128x128xf32>
    %c0_2 = arith.constant 0 : index
    %c0_3 = arith.constant 0 : index
    %4 = vector.load %arg2[%c0_2, %c0_3] : memref<128x128xbf16, #tpu.memory_space<vmem>>, vector<128x128xbf16>
    %c0_4 = arith.constant 0 : index
    %c0_5 = arith.constant 0 : index
    %5 = vector.load %arg3[%c0_4, %c0_5] : memref<128x128xbf16, #tpu.memory_space<vmem>>, vector<128x128xbf16>
    %cst = arith.constant dense<0.000000e+00> : vector<128x128xf32>
    %6 = tpu.matmul %4, %5, %cst {dimension_numbers = #tpu.dot_dimension_numbers<[1], [0], [0], [1], [0, 0, 1, 1], [], []>} : vector<128x128xbf16>, vector<128x128xbf16>, vector<128x128xf32> -> vector<128x128xf32>
    %7 = arith.addf %3, %6 : vector<128x128xf32>
    %c0_6 = arith.constant 0 : index
    %c0_7 = arith.constant 0 : index
    %8 = vector.load %arg10[%c0_6, %c0_7] : memref<128x128xf32, #tpu.memory_space<vmem>>, vector<128x128xf32>
    tpu.vector_store %arg10[%c0_6, %c0_7], %7 {strides = array<i32>} : memref<128x128xf32, #tpu.memory_space<vmem>>, vector<128x128xf32>,
    %c0_i32_8 = arith.constant 0 : i32
    %9 = arith.cmpi eq, %arg1, %c0_i32_8 : i32
    %10 = arith.extui %9 : i1 to i32
    %c0_i32_9 = arith.constant 0 : i32
    %11 = arith.cmpi ne, %10, %c0_i32_9 : i32
    scf.if %11 {
      %c0_10 = arith.constant 0 : index
      %c0_11 = arith.constant 0 : index
      %12 = vector.load %arg5[%c0_10, %c0_11] : memref<128x128xf32, #tpu.memory_space<vmem>>, vector<128x128xf32>
      %c0_12 = arith.constant 0 : index
      %c0_13 = arith.constant 0 : index
      %13 = vector.load %arg10[%c0_12, %c0_13] : memref<128x128xf32, #tpu.memory_space<vmem>>, vector<128x128xf32>
      %14 = arith.truncf %13 : vector<128x128xf32> to vector<128x128xbf16>
      %c0_14 = arith.constant 0 : index
      %c0_15 = arith.constant 0 : index
      %15 = vector.load %arg7[%c0_14, %c0_15] : memref<128x128xbf16, #tpu.memory_space<vmem>>, vector<128x128xbf16>
      %cst_16 = arith.constant dense<0.000000e+00> : vector<128x128xf32>
      %16 = tpu.matmul %14, %15, %cst_16 {dimension_numbers = #tpu.dot_dimension_numbers<[1], [0], [0], [1], [0, 0, 1, 1], [], []>} : vector<128x128xbf16>, vector<128x128xbf16>, vector<128x128xf32> -> vector<128x128xf32>
      %17 = arith.addf %12, %16 : vector<128x128xf32>
      %c0_17 = arith.constant 0 : index
      %c0_18 = arith.constant 0 : index
      %18 = vector.load %arg8[%c0_17, %c0_18] : memref<1x128xf32, #tpu.memory_space<vmem>>, vector<1x128xf32>
      %19 = vector.broadcast %18 : vector<1x128xf32> to vector<128x128xf32>
      %20 = arith.addf %17, %19 : vector<128x128xf32>
      %21 = math.tanh %20 : vector<128x128xf32>
      %c0_19 = arith.constant 0 : index
      %c0_20 = arith.constant 0 : index
      %22 = vector.load %arg4[%c0_19, %c0_20] : memref<128x128xbf16, #tpu.memory_space<vmem>>, vector<128x128xbf16>
      %23 = arith.extf %22 : vector<128x128xbf16> to vector<128x128xf32>
      %c0_21 = arith.constant 0 : index
      %c0_22 = arith.constant 0 : index
      %24 = vector.load %arg6[%c0_21, %c0_22] : memref<128x128xbf16, #tpu.memory_space<vmem>>, vector<128x128xbf16>
      %25 = arith.extf %24 : vector<128x128xbf16> to vector<128x128xf32>
      %26 = arith.mulf %23, %25 : vector<128x128xf32>
      %cst_23 = arith.constant 1.000000e+00 : f32
      %27 = vector.broadcast %cst_23 : f32 to vector<128x128xf32>
      %28 = arith.subf %27, %23 : vector<128x128xf32>
      %29 = arith.mulf %28, %21 : vector<128x128xf32>
      %30 = arith.addf %26, %29 : vector<128x128xf32>
      %31 = arith.truncf %30 : vector<128x128xf32> to vector<128x128xbf16>
      %c0_24 = arith.constant 0 : index
      %c0_25 = arith.constant 0 : index
      %32 = vector.load %arg9[%c0_24, %c0_25] : memref<128x128xbf16, #tpu.memory_space<vmem>>, vector<128x128xbf16>
      tpu.vector_store %arg9[%c0_24, %c0_25], %31 {strides = array<i32>} : memref<128x128xbf16, #tpu.memory_space<vmem>>, vector<128x128xbf16>,
    } else {
    }
    return
  }
  func.func @transform_0(%arg0: i32, %arg1: i32) -> (i32, i32) {
    %c0_i32 = arith.constant 0 : i32
    return %arg0, %arg1 : i32, i32
  }
  func.func @transform_1(%arg0: i32, %arg1: i32) -> (i32, i32) {
    %c0_i32 = arith.constant 0 : i32
    %c0_i32_0 = arith.constant 0 : i32
    return %arg1, %c0_i32 : i32, i32
  }
  func.func @transform_2(%arg0: i32, %arg1: i32) -> (i32, i32) {
    %c0_i32 = arith.constant 0 : i32
    %c0_i32_0 = arith.constant 0 : i32
    return %arg0, %c0_i32 : i32, i32
  }
  func.func @transform_3(%arg0: i32, %arg1: i32) -> (i32, i32) {
    %c0_i32 = arith.constant 0 : i32
    %c0_i32_0 = arith.constant 0 : i32
    return %arg0, %c0_i32 : i32, i32
  }
  func.func @transform_4(%arg0: i32, %arg1: i32) -> (i32, i32) {
    %c0_i32 = arith.constant 0 : i32
    %c0_i32_0 = arith.constant 0 : i32
    return %arg0, %c0_i32 : i32, i32
  }
  func.func @transform_5(%arg0: i32, %arg1: i32) -> (i32, i32) {
    %c0_i32 = arith.constant 0 : i32
    %c0_i32_0 = arith.constant 0 : i32
    %c0_i32_1 = arith.constant 0 : i32
    return %c0_i32, %c0_i32_0 : i32, i32
  }
  func.func @transform_6(%arg0: i32, %arg1: i32) -> (i32, i32) {
    %c0_i32 = arith.constant 0 : i32
    %c0_i32_0 = arith.constant 0 : i32
    %c0_i32_1 = arith.constant 0 : i32
    return %c0_i32, %c0_i32_0 : i32, i32
  }
  func.func @transform_7(%arg0: i32, %arg1: i32) -> (i32, i32) {
    %c0_i32 = arith.constant 0 : i32
    %c0_i32_0 = arith.constant 0 : i32
    return %arg0, %c0_i32 : i32, i32
  }
}

</mosaic_0001>

<bundles_post_ra>
// kernel: graph_gru_sage_forward.5
= control target key start
LH: loop header
LB: loop body
LE: loop exit
PB: predicated region body
PF: predicated region fallthrough
CT: control target
= control target key end

     0   :  { %s1190_s1 = inlined_call_operand.vmem [shape: bf16[128,128], index: 1, kind: input, shape index: {}]   ;;  %s1191_s0 = inlined_call_operand.vmem [shape: bf16[128,128], index: 0, kind: input, shape index: {}]   ;;  %s1192_s5 = inlined_call_operand.vmem [shape: bf16[128,128], index: 5, kind: input, shape index: {}]   ;;  %s1193_s6 = inlined_call_operand.vmem [shape: f32[1,128], index: 6, kind: input, shape index: {}]   ;;  %s1194_s3 = inlined_call_operand.vmem [shape: f32[128,128], index: 3, kind: input, shape index: {}]   ;;  %s1195_s2 = inlined_call_operand.vmem [shape: bf16[128,128], index: 2, kind: input, shape index: {}]   ;;  %s1196_s4 = inlined_call_operand.vmem [shape: bf16[128,128], index: 4, kind: input, shape index: {}]   ;;  %s1197_s7 = inlined_call_operand.vmem [shape: bf16[128,128], index: 7, kind: output, shape index: {}]  }
   0x1   :  { %v754_v0 = vld [vmem:[%s1190_s1 + $0x38] sm:$0xff]  ;;  %v753_v1 = vld [vmem:[%s1190_s1 + $0x30] sm:$0xff]  ;;  %v752_v2 = vld [vmem:[%s1190_s1 + $0x28] sm:$0xff] }
   0x2   :  { %190 = vmatpush.bf16.msra.mxu0 %v754_v0  ;;  %888 = vmatpush.bf16.msra.mxu2 %v754_v0  ;;  %v751_v3 = vld [vmem:[%s1190_s1 + $0x20] sm:$0xff]  ;;  %v750_v4 = vld [vmem:[%s1190_s1 + $0x18] sm:$0xff]  ;;  %v749_v5 = vld [vmem:[%s1190_s1 + $0x10] sm:$0xff] }
   0x3   :  { %v748_v6 = vld [vmem:[%s1190_s1 + $0x8] sm:$0xff]  ;;  %v747_v7 = vld [vmem:[%s1190_s1] sm:$0xff]  ;;  %v762_v12 = vld [vmem:[%s1192_s5 + $0x38] sm:$0xff] }
   0x4   :  { %v739_v8 = vld [vmem:[%s1191_s0] sm:$0xff]  ;;  %v740_v10 = vld [vmem:[%s1191_s0 + $0x8] sm:$0xff]  ;;  %378 = vmatpush.bf16.msra.mxu1 %v762_v12  ;;  %v761_v13 = vld [vmem:[%s1192_s5 + $0x30] sm:$0xff]  ;;  %896 = vmatpush.bf16.msra.mxu3 %v762_v12 }
   0x5   :  { %v743_v9 = vld [vmem:[%s1191_s0 + $0x20] sm:$0xff]  ;;  %v744_v11 = vld [vmem:[%s1191_s0 + $0x28] sm:$0xff]  ;;  %v741_v16 = vld [vmem:[%s1191_s0 + $0x10] sm:$0xff] }
   0x6   :  { %191 = vmatpush.bf16.msra.mxu0 %v753_v1  ;;  %889 = vmatpush.bf16.msra.mxu2 %v753_v1  ;;  %v760_v14 = vld [vmem:[%s1192_s5 + $0x28] sm:$0xff]  ;;  %v759_v15 = vld [vmem:[%s1192_s5 + $0x20] sm:$0xff]  ;;  %v745_v17 = vld [vmem:[%s1191_s0 + $0x30] sm:$0xff] }
   0x7   :  { %v758_v18 = vld [vmem:[%s1192_s5 + $0x18] sm:$0xff]  ;;  %v757_v21 = vld [vmem:[%s1192_s5 + $0x10] sm:$0xff]  ;;  %v756_v22 = vld [vmem:[%s1192_s5 + $0x8] sm:$0xff] }
   0x8   :  { %379 = vmatpush.bf16.msra.mxu1 %v761_v13  ;;  %897 = vmatpush.bf16.msra.mxu3 %v761_v13  ;;  %v742_v19 = vld [vmem:[%s1191_s0 + $0x18] sm:$0xff]  ;;  %v755_v23 = vld [vmem:[%s1192_s5] sm:$0xff]  ;;  %v275_v53 = vld [vmem:[%s1194_s3 + $0x8] sm:$0xff] }
   0x9   :  { %v746_v20 = vld [vmem:[%s1191_s0 + $0x38] sm:$0xff]  ;;  %v274_v48 = vld [vmem:[%s1194_s3] sm:$0xff]  ;;  %v283_v12 = vld [vmem:[%s1194_s3 + $0x48] sm:$0xff] }
   0xa   :  { %192 = vmatpush.bf16.msra.mxu0 %v752_v2  ;;  %890 = vmatpush.bf16.msra.mxu2 %v752_v2  ;;  %v1055_v51 = vld [vmem:[%s1193_s6] ss:$0 sm:$0xff] }
   0xb   :  { %v764_v54 = vld [vmem:[%s1195_s2] sm:$0xff]  }
   0xc   :  { %380 = vmatpush.bf16.msra.mxu1 %v760_v14  ;;  %898 = vmatpush.bf16.msra.mxu3 %v760_v14  ;;  %v765_v57 = vunpack.c.l.bf16 %v764_v54  ;;  %v282_v58 = vld [vmem:[%s1194_s3 + $0x40] sm:$0xff]  ;;  %v766_v61 = vunpack.c.h.bf16 %v764_v54 }
   0xd   :  { %v796_v59 = vld [vmem:[%s1196_s4] sm:$0xff]  }
   0xe   :  { %193 = vmatpush.bf16.msra.mxu0 %v751_v3  ;;  %891 = vmatpush.bf16.msra.mxu2 %v751_v3  ;;  %v797_v0 = vunpack.c.l.bf16 %v796_v59  ;;  %v559_v1 = vsub.f32 1.0, %v765_v57  ;;  %v798_v2 = vunpack.c.h.bf16 %v796_v59  ;;  %v276_v3 = vld [vmem:[%s1194_s3 + $0x10] sm:$0xff]  ;;  %v870_v14 = vld [vmem:[%s1195_s2 + $0x20] sm:$0xff]  }
  0x10   :  { %381 = vmatpush.bf16.msra.mxu1 %v759_v15  ;;  %899 = vmatpush.bf16.msra.mxu3 %v759_v15 }
  0x12   :  { %194 = vmatpush.bf16.msra.mxu0 %v750_v4  ;;  %892 = vmatpush.bf16.msra.mxu2 %v750_v4 }
  0x14   :  { %382 = vmatpush.bf16.msra.mxu1 %v758_v18  ;;  %900 = vmatpush.bf16.msra.mxu3 %v758_v18 }
  0x16   :  { %195 = vmatpush.bf16.msra.mxu0 %v749_v5  ;;  %893 = vmatpush.bf16.msra.mxu2 %v749_v5  ;;  %v560_v5 = vsub.f32 1.0, %v766_v61 }
  0x18   :  { %383 = vmatpush.bf16.msra.mxu1 %v757_v21  ;;  %901 = vmatpush.bf16.msra.mxu3 %v757_v21  ;;  %v781_v21 = vunpack.c.l.bf16 %v870_v14 }
  0x1a   :  { %196 = vmatpush.bf16.msra.mxu0 %v748_v6  ;;  %894 = vmatpush.bf16.msra.mxu2 %v748_v6 }
  0x1c   :  { %384 = vmatpush.bf16.msra.mxu1 %v756_v22  ;;  %902 = vmatpush.bf16.msra.mxu3 %v756_v22  ;;  %v877_v22 = vld [vmem:[%s1196_s4 + $0x20] sm:$0xff]  }
  0x1e   :  { %197 = vmatpush.bf16.msra.mxu0 %v747_v7  ;;  %895 = vmatpush.bf16.msra.mxu2 %v747_v7 }
  0x20   :  { %385 = vmatpush.bf16.msra.mxu1 %v755_v23  ;;  %903 = vmatpush.bf16.msra.mxu3 %v755_v23  ;;  %v277_v23 = vld [vmem:[%s1194_s3 + $0x18] sm:$0xff] }
  0x21   :  { %198 = vmatmul.bf16.vlgmr.msra.gmra.mxu0 %v739_v8  ;;  %218 = vmatmul.bf16.vlgmr.msra.gmra.mxu2 %v743_v9  ;;  %v543_v9 = vmul.f32 %v797_v0, %v765_v57  ;;  %v871_v0 = vld [vmem:[%s1195_s2 + $0x28] sm:$0xff]  }
  0x31   :  { %203 = vmatmul.bf16.gmra.mxu0 %v740_v10  ;;  %223 = vmatmul.bf16.gmra.mxu2 %v744_v11  ;;  %v544_v11 = vmul.f32 %v798_v2, %v766_v61 }
  0x41   :  { %208 = vmatmul.bf16.gmra.mxu0 %v741_v16  ;;  %228 = vmatmul.bf16.gmra.mxu2 %v745_v17 }
  0x51   :  { %213 = vmatmul.bf16.gmra.mxu0 %v742_v19  ;;  %233 = vmatmul.bf16.gmra.mxu2 %v746_v20 }
  0x9e   :  { %v199_v24 = vpop.f32.mrf.mxu0 }
  0xa4   :  { %v219_v25 = vpop.f32.mrf.mxu2 }
  0xa6   :  { %v201_v26 = vpop.f32.mrf.mxu0 }
  0xa7   :  { %v306_v27 = vpack.c.bf16 %v201_v26, %v199_v24  ;;  %v867_v24 = vld [vmem:[%s1195_s2 + $0x8] sm:$0xff]  }
  0xa9   :  { %386 = vmatmul.bf16.vlgmr.msra.gmra.mxu1 %v306_v27  ;;  %v782_v27 = vunpack.c.h.bf16 %v870_v14  ;;  %v786_v14 = vunpack.c.h.bf16 %v871_v0 }
  0xac   :  { %v221_v28 = vpop.f32.mrf.mxu2 }
  0xad   :  { %v310_v29 = vpack.c.bf16 %v221_v28, %v219_v25 }
  0xae   :  { %v204_v30 = vpop.f32.mrf.mxu0 }
  0xaf   :  { %406 = vmatmul.bf16.vlgmr.msra.gmra.mxu3 %v310_v29  ;;  %v813_v29 = vunpack.c.l.bf16 %v877_v22 }
  0xb4   :  { %v224_v31 = vpop.f32.mrf.mxu2 }
  0xb6   :  { %v206_v32 = vpop.f32.mrf.mxu0 }
  0xb7   :  { %v307_v33 = vpack.c.bf16 %v206_v32, %v204_v30  ;;  %v769_v32 = vunpack.c.l.bf16 %v867_v24 }
  0xb9   :  { %391 = vmatmul.bf16.gmra.mxu1 %v307_v33  ;;  %v874_v33 = vld [vmem:[%s1196_s4 + $0x8] sm:$0xff]  }
  0xbc   :  { %v226_v34 = vpop.f32.mrf.mxu2 }
  0xbd   :  { %v311_v35 = vpack.c.bf16 %v226_v34, %v224_v31  ;;  %v567_v31 = vsub.f32 1.0, %v781_v21  ;;  %v814_v34 = vunpack.c.h.bf16 %v877_v22  ;;  %v286_v22 = vld [vmem:[%s1194_s3 + $0x60] sm:$0xff] }
  0xbe   :  { %v209_v36 = vpop.f32.mrf.mxu0 }
  0xbf   :  { %411 = vmatmul.bf16.gmra.mxu3 %v311_v35  ;;  %v284_v35 = vld [vmem:[%s1194_s3 + $0x50] sm:$0xff] }
  0xc4   :  { %v229_v37 = vpop.f32.mrf.mxu2 }
  0xc6   :  { %v211_v38 = vpop.f32.mrf.mxu0 }
  0xc7   :  { %v308_v39 = vpack.c.bf16 %v211_v38, %v209_v36  ;;  %v568_v38 = vsub.f32 1.0, %v782_v27 }
  0xc9   :  { %396 = vmatmul.bf16.gmra.mxu1 %v308_v39  ;;  %v770_v39 = vunpack.c.h.bf16 %v867_v24 }
  0xcc   :  { %v231_v40 = vpop.f32.mrf.mxu2 }
  0xcd   :  { %v312_v41 = vpack.c.bf16 %v231_v40, %v229_v37 }
  0xce   :  { %v214_v42 = vpop.f32.mrf.mxu0 }
  0xcf   :  { %416 = vmatmul.bf16.gmra.mxu3 %v312_v41  ;;  %v551_v41 = vmul.f32 %v813_v29, %v781_v21 }
  0xd4   :  { %v234_v43 = vpop.f32.mrf.mxu2 }
  0xd6   :  { %v216_v44 = vpop.f32.mrf.mxu0 }
  0xd7   :  { %v309_v45 = vpack.c.bf16 %v216_v44, %v214_v42  ;;  %v801_v42 = vunpack.c.l.bf16 %v874_v33 }
  0xd9   :  { %401 = vmatmul.bf16.gmra.mxu1 %v309_v45 }
  0xdc   :  { %v236_v46 = vpop.f32.mrf.mxu2 }
  0xdd   :  { %v313_v47 = vpack.c.bf16 %v236_v46, %v234_v43  ;;  %v561_v46 = vsub.f32 1.0, %v769_v32 }
  0xdf   :  { %421 = vmatmul.bf16.gmra.mxu3 %v313_v47  ;;  %v552_v47 = vmul.f32 %v814_v34, %v782_v27 }
 0x126   :  { %v387_v49 = vpop.f32.mrf.mxu1 }
 0x127   :  { %v427_v50 = vadd.f32 %v387_v49, %v274_v48  ;;  %v802_v48 = vunpack.c.h.bf16 %v874_v33  ;;  %v278_v49 = vld [vmem:[%s1194_s3 + $0x20] sm:$0xff] }
 0x129   :  { %v447_v52 = vadd.f32 %v1055_v51, %v427_v50  ;;  %v546_v61 = vmul.f32 %v802_v48, %v770_v39  ;;  %v287_v48 = vld [vmem:[%s1194_s3 + $0x68] sm:$0xff] }
 0x12b   :  { %905 = vtanh.f32 %v447_v52 }
 0x12e   :  { %v389_v55 = vpop.f32.mrf.mxu1 }
 0x12f   :  { %v428_v56 = vadd.f32 %v389_v55, %v275_v53  ;;  %v562_v53 = vsub.f32 1.0, %v770_v39  ;;  %v545_v55 = vmul.f32 %v801_v42, %v769_v32 }
 0x131   :  { %v448_v60 = vadd.f32 %v1055_v51, %v428_v56  ;;  %v906_v4 = vpop.eup %905 }
 0x132   :  { %v407_v62 = vpop.f32.mrf.mxu3  ;;  %v575_v10 = vmul.f32 %v906_v4, %v559_v1 }
 0x133   :  { %907 = vtanh.f32 %v448_v60  ;;  %v435_v63 = vadd.f32 %v407_v62, %v282_v58  ;;  %v285_v62 = vld [vmem:[%s1194_s3 + $0x58] sm:$0xff] }
 0x134   :  { %v591_v19 = vadd.f32 %v575_v10, %v543_v9  ;;  %v878_v9 = vld [vmem:[%s1196_s4 + $0x28] sm:$0xff]  }
 0x135   :  { %v455_v7 = vadd.f32 %v1055_v51, %v435_v63  ;;  %v279_v10 = vld [vmem:[%s1194_s3 + $0x28] sm:$0xff]  ;;  %v818_v21 = vunpack.c.h.bf16 %v878_v9 }
 0x136   :  { %v392_v6 = vpop.f32.mrf.mxu1 }
 0x137   :  { %v429_v8 = vadd.f32 %v392_v6, %v276_v3  ;;  %909 = vtanh.f32 %v455_v7  ;;  %v554_v34 = vmul.f32 %v818_v21, %v786_v14 }
 0x139   :  { %v908_v13 = vpop.eup %907  ;;  %v449_v16 = vadd.f32 %v1055_v51, %v429_v8  ;;  %v785_v8 = vunpack.c.l.bf16 %v871_v0 }
 0x13a   :  { %v576_v15 = vmul.f32 %v908_v13, %v560_v5  ;;  %v409_v17 = vpop.f32.mrf.mxu3 }
 0x13b   :  { %v436_v18 = vadd.f32 %v409_v17, %v283_v12  ;;  %911 = vtanh.f32 %v449_v16  ;;  %v817_v16 = vunpack.c.l.bf16 %v878_v9  ;;  %v288_v9 = vld [vmem:[%s1194_s3 + $0x70] sm:$0xff] }
 0x13c   :  { %v592_v20 = vadd.f32 %v576_v15, %v544_v11  ;;  %v868_v11 = vld [vmem:[%s1195_s2 + $0x10] sm:$0xff]  }
 0x13d   :  { %v456_v25 = vadd.f32 %v1055_v51, %v436_v18  ;;  %v910_v36 = vpop.eup %909  ;;  %v569_v18 = vsub.f32 1.0, %v785_v8 }
 0x13e   :  { %v830_v26 = vpack.c.bf16 %v592_v20, %v591_v19  ;;  %v394_v28 = vpop.f32.mrf.mxu1  ;;  %v583_v45 = vmul.f32 %v910_v36, %v567_v31  ;;  %v773_v19 = vunpack.c.l.bf16 %v868_v11  ;;  %v875_v20 = vld [vmem:[%s1196_s4 + $0x10] sm:$0xff]  }
 0x13f   :  { %913 = vtanh.f32 %v456_v25  ;;  %v430_v30 = vadd.f32 %v394_v28, %v277_v23  ;;  %v570_v25 = vsub.f32 1.0, %v786_v14  ;;  %v553_v28 = vmul.f32 %v817_v16, %v785_v8  ;;  %v280_v36 = vld [vmem:[%s1194_s3 + $0x30] sm:$0xff] }
 0x140   :  { %831 = vst [vmem:[%s1197_s7] sm:$0xff] %v830_v26   ;;  %v599_v58 = vadd.f32 %v583_v45, %v551_v41  ;;  %v774_v26 = vunpack.c.h.bf16 %v868_v11  ;;  %v805_v29 = vunpack.c.l.bf16 %v875_v20  ;;  %v563_v33 = vsub.f32 1.0, %v773_v19 }
 0x141   :  { %v450_v37 = vadd.f32 %v1055_v51, %v430_v30  ;;  %v912_v44 = vpop.eup %911 }
 0x142   :  { %v412_v40 = vpop.f32.mrf.mxu3  ;;  %v577_v59 = vmul.f32 %v912_v44, %v561_v46  ;;  %v564_v39 = vsub.f32 1.0, %v774_v26  ;;  %v547_v41 = vmul.f32 %v805_v29, %v773_v19 }
 0x143   :  { %915 = vtanh.f32 %v450_v37  ;;  %v437_v43 = vadd.f32 %v412_v40, %v284_v35  ;;  %v806_v35 = vunpack.c.h.bf16 %v875_v20 }
 0x144   :  { %v593_v6 = vadd.f32 %v577_v59, %v545_v55 }
 0x145   :  { %v914_v50 = vpop.eup %913  ;;  %v457_v56 = vadd.f32 %v1055_v51, %v437_v43 }
 0x146   :  { %v584_v52 = vmul.f32 %v914_v50, %v568_v38  ;;  %v397_v54 = vpop.f32.mrf.mxu1  ;;  %v872_v50 = vld [vmem:[%s1195_s2 + $0x30] sm:$0xff]  }
 0x147   :  { %v431_v57 = vadd.f32 %v397_v54, %v278_v49  ;;  %917 = vtanh.f32 %v457_v56  ;;  %v789_v59 = vunpack.c.l.bf16 %v872_v50 }
 0x148   :  { %v600_v60 = vadd.f32 %v584_v52, %v552_v47  ;;  %v548_v47 = vmul.f32 %v806_v35, %v774_v26 }
 0x149   :  { %v916_v63 = vpop.eup %915  ;;  %v451_v3 = vadd.f32 %v1055_v51, %v431_v57 }
 0x14a   :  { %v850_v1 = vpack.c.bf16 %v600_v60, %v599_v58  ;;  %v578_v2 = vmul.f32 %v916_v63, %v562_v53  ;;  %v414_v4 = vpop.f32.mrf.mxu3  ;;  %v879_v60 = vld [vmem:[%s1196_s4 + $0x30] sm:$0xff]  }
 0x14b   :  { %v438_v5 = vadd.f32 %v414_v4, %v285_v62  ;;  %919 = vtanh.f32 %v451_v3  ;;  %v869_v62 = vld [vmem:[%s1195_s2 + $0x18] sm:$0xff]   ;;  %v821_v3 = vunpack.c.l.bf16 %v879_v60  ;;  %v822_v8 = vunpack.c.h.bf16 %v879_v60 }
 0x14c   :  { %884 = vst [vmem:[%s1197_s7 + $0x20] sm:$0xff] %v850_v1   ;;  %v594_v7 = vadd.f32 %v578_v2, %v546_v61  ;;  %v281_v61 = vld [vmem:[%s1194_s3 + $0x38] sm:$0xff]  ;;  %v790_v1 = vunpack.c.h.bf16 %v872_v50 }
 0x14d   :  { %v458_v12 = vadd.f32 %v1055_v51, %v438_v5  ;;  %v918_v23 = vpop.eup %917  ;;  %v571_v5 = vsub.f32 1.0, %v789_v59 }
 0x14e   :  { %v835_v13 = vpack.c.bf16 %v594_v7, %v593_v6  ;;  %v399_v15 = vpop.f32.mrf.mxu1  ;;  %v585_v32 = vmul.f32 %v918_v23, %v569_v18  ;;  %v777_v6 = vunpack.c.l.bf16 %v869_v62  ;;  %v876_v7 = vld [vmem:[%s1196_s4 + $0x18] sm:$0xff]   ;;  %v556_v21 = vmul.f32 %v822_v8, %v790_v1 }
 0x14f   :  { %921 = vtanh.f32 %v458_v12  ;;  %v432_v17 = vadd.f32 %v399_v15, %v279_v10  ;;  %v572_v12 = vsub.f32 1.0, %v790_v1  ;;  %v555_v15 = vmul.f32 %v821_v3, %v789_v59 }
 0x150   :  { %881 = vst [vmem:[%s1197_s7 + $0x8] sm:$0xff] %v835_v13   ;;  %v601_v44 = vadd.f32 %v585_v32, %v553_v28  ;;  %v778_v13 = vunpack.c.h.bf16 %v869_v62  ;;  %v809_v16 = vunpack.c.l.bf16 %v876_v7  ;;  %v565_v20 = vsub.f32 1.0, %v777_v6  ;;  %v289_v32 = vld [vmem:[%s1194_s3 + $0x78] sm:$0xff] }
 0x151   :  { %v452_v24 = vadd.f32 %v1055_v51, %v432_v17  ;;  %v920_v31 = vpop.eup %919 }
 0x152   :  { %v417_v27 = vpop.f32.mrf.mxu3  ;;  %v579_v45 = vmul.f32 %v920_v31, %v563_v33  ;;  %v549_v26 = vmul.f32 %v809_v16, %v777_v6 }
 0x153   :  { %923 = vtanh.f32 %v452_v24  ;;  %v439_v30 = vadd.f32 %v417_v27, %v286_v22  ;;  %v810_v22 = vunpack.c.h.bf16 %v876_v7 }
 0x154   :  { %v595_v57 = vadd.f32 %v579_v45, %v547_v41 }
 0x155   :  { %v922_v37 = vpop.eup %921  ;;  %v459_v42 = vadd.f32 %v1055_v51, %v439_v30  ;;  %v550_v31 = vmul.f32 %v810_v22, %v778_v13 }
 0x156   :  { %v586_v38 = vmul.f32 %v922_v37, %v570_v25  ;;  %v402_v40 = vpop.f32.mrf.mxu1  ;;  %v566_v25 = vsub.f32 1.0, %v778_v13 }
 0x157   :  { %v433_v43 = vadd.f32 %v402_v40, %v280_v36  ;;  %925 = vtanh.f32 %v459_v42  ;;  %v880_v42 = vld [vmem:[%s1196_s4 + $0x38] sm:$0xff]  }
 0x158   :  { %v602_v46 = vadd.f32 %v586_v38, %v554_v34  ;;  %v873_v34 = vld [vmem:[%s1195_s2 + $0x38] sm:$0xff]  }
 0x159   :  { %v924_v49 = vpop.eup %923  ;;  %v453_v54 = vadd.f32 %v1055_v51, %v433_v43  ;;  %v793_v41 = vunpack.c.l.bf16 %v873_v34  ;;  %v794_v45 = vunpack.c.h.bf16 %v873_v34 }
 0x15a   :  { %v855_v52 = vpack.c.bf16 %v602_v46, %v601_v44  ;;  %v580_v53 = vmul.f32 %v924_v49, %v564_v39  ;;  %v419_v55 = vpop.f32.mrf.mxu3  ;;  %v825_v46 = vunpack.c.l.bf16 %v880_v42 }
 0x15b   :  { %v440_v56 = vadd.f32 %v419_v55, %v287_v48  ;;  %927 = vtanh.f32 %v453_v54  ;;  %v826_v48 = vunpack.c.h.bf16 %v880_v42  ;;  %v574_v50 = vsub.f32 1.0, %v794_v45 }
 0x15c   :  { %885 = vst [vmem:[%s1197_s7 + $0x28] sm:$0xff] %v855_v52   ;;  %v596_v58 = vadd.f32 %v580_v53, %v548_v47  ;;  %v573_v47 = vsub.f32 1.0, %v793_v41  ;;  %v557_v52 = vmul.f32 %v825_v46, %v793_v41 }
 0x15d   :  { %v460_v63 = vadd.f32 %v1055_v51, %v440_v56  ;;  %v926_v10 = vpop.eup %925  ;;  %v558_v54 = vmul.f32 %v826_v48, %v794_v45 }
 0x15e   :  { %v840_v0 = vpack.c.bf16 %v596_v58, %v595_v57  ;;  %v404_v2 = vpop.f32.mrf.mxu1  ;;  %v587_v19 = vmul.f32 %v926_v10, %v571_v5 }
 0x15f   :  { %929 = vtanh.f32 %v460_v63  ;;  %v434_v4 = vadd.f32 %v404_v2, %v281_v61 }
 0x160   :  { %882 = vst [vmem:[%s1197_s7 + $0x10] sm:$0xff] %v840_v0   ;;  %v603_v28 = vadd.f32 %v587_v19, %v555_v15 }
 0x161   :  { %v454_v11 = vadd.f32 %v1055_v51, %v434_v4  ;;  %v928_v18 = vpop.eup %927 }
 0x162   :  { %v422_v14 = vpop.f32.mrf.mxu3  ;;  %v581_v29 = vmul.f32 %v928_v18, %v565_v20 }
 0x163   :  { %931 = vtanh.f32 %v454_v11  ;;  %v441_v17 = vadd.f32 %v422_v14, %v288_v9 }
 0x164   :  { %v597_v39 = vadd.f32 %v581_v29, %v549_v26 }
 0x165   :  { %v930_v23 = vpop.eup %929  ;;  %v461_v27 = vadd.f32 %v1055_v51, %v441_v17 }
 0x166   :  { %v588_v24 = vmul.f32 %v930_v23, %v572_v12 }
 0x167   :  { %933 = vtanh.f32 %v461_v27 }
 0x168   :  { %v604_v30 = vadd.f32 %v588_v24, %v556_v21 }
 0x169   :  { %v932_v33 = vpop.eup %931 }
 0x16a   :  { %v860_v35 = vpack.c.bf16 %v604_v30, %v603_v28  ;;  %v582_v36 = vmul.f32 %v932_v33, %v566_v25  ;;  %v424_v37 = vpop.f32.mrf.mxu3 }
 0x16b   :  { %v442_v38 = vadd.f32 %v424_v37, %v289_v32 }
 0x16c   :  { %886 = vst [vmem:[%s1197_s7 + $0x30] sm:$0xff] %v860_v35   ;;  %v598_v40 = vadd.f32 %v582_v36, %v550_v31 }
 0x16d   :  { %v462_v43 = vadd.f32 %v1055_v51, %v442_v38  ;;  %v934_v49 = vpop.eup %933 }
 0x16e   :  { %v845_v44 = vpack.c.bf16 %v598_v40, %v597_v39  ;;  %v589_v53 = vmul.f32 %v934_v49, %v573_v47 }
 0x16f   :  { %935 = vtanh.f32 %v462_v43 }
 0x170   :  { %883 = vst [vmem:[%s1197_s7 + $0x18] sm:$0xff] %v845_v44   ;;  %v605_v57 = vadd.f32 %v589_v53, %v557_v52 }
 0x175   :  { %v936_v55 = vpop.eup %935 }
 0x176   :  { %v590_v56 = vmul.f32 %v936_v55, %v574_v50 }
 0x178   :  { %v606_v58 = vadd.f32 %v590_v56, %v558_v54 }
 0x17a   :  { %v865_v51 = vpack.c.bf16 %v606_v58, %v605_v57 }
 0x17c   :  { %887 = vst [vmem:[%s1197_s7 + $0x38] sm:$0xff] %v865_v51  }

// kernel: graph_gru_sage_forward.4
= control target key start
LH: loop header
LB: loop body
LE: loop exit
PB: predicated region body
PF: predicated region fallthrough
CT: control target
= control target key end

     0   :  { %s3724_s2 = inlined_call_operand.vmem [shape: bf16[128,128], index: 2, kind: input, shape index: {}, may-alias: {2,3}]   ;;  %s3725_s1 = inlined_call_operand.vmem [shape: bf16[128,128], index: 1, kind: input, shape index: {}]   ;;  %s3726_s0 = inlined_call_operand.vmem [shape: bf16[128,128], index: 0, kind: input, shape index: {}]   ;;  %s3727_s5 = inlined_call_operand.vmem [shape: bf16[128,384], index: 5, kind: input, shape index: {}]   ;;  %s3728_s4 = inlined_call_operand.vmem [shape: bf16[128,384], index: 4, kind: input, shape index: {}]   ;;  %s3729_s6 = inlined_call_operand.vmem [shape: f32[1,384], index: 6, kind: input, shape index: {}]   ;;  %s3730_s7 = inlined_call_operand.vmem [shape: bf16[128,128], index: 7, kind: output, shape index: {0}]   ;;  %s3731_s9 = inlined_call_operand.vmem [shape: f32[128,128], index: 9, kind: output, shape index: {2}]   ;;  %s3732_s3 = inlined_call_operand.vmem [shape: bf16[128,128], index: 3, kind: input, shape index: {}, may-alias: {2,3}]   ;;  %s3733_s8 = inlined_call_operand.vmem [shape: bf16[128,128], index: 8, kind: output, shape index: {1}]  }
   0x1   :  { %v2367_v0 = vld [vmem:[%s3724_s2 + $0x38] sm:$0xff]  ;;  %v2366_v2 = vld [vmem:[%s3724_s2 + $0x30] sm:$0xff]  ;;  %v2365_v4 = vld [vmem:[%s3724_s2 + $0x28] sm:$0xff] }
   0x2   :  { %v2351_v1 = vld [vmem:[%s3725_s1 + $0x38] sm:$0xff]  ;;  %434 = vmatpush.bf16.msra.mxu1 %v2367_v0  ;;  %v2350_v3 = vld [vmem:[%s3725_s1 + $0x30] sm:$0xff]  ;;  %v2349_v5 = vld [vmem:[%s3725_s1 + $0x28] sm:$0xff] }
   0x3   :  { %209 = vmatpush.bf16.msra.mxu0 %v2351_v1  ;;  %v2364_v6 = vld [vmem:[%s3724_s2 + $0x20] sm:$0xff]  ;;  %v2363_v8 = vld [vmem:[%s3724_s2 + $0x18] sm:$0xff]  ;;  %v2362_v10 = vld [vmem:[%s3724_s2 + $0x10] sm:$0xff] }
   0x4   :  { %v2348_v7 = vld [vmem:[%s3725_s1 + $0x20] sm:$0xff]  ;;  %v2347_v9 = vld [vmem:[%s3725_s1 + $0x18] sm:$0xff]  ;;  %v2346_v11 = vld [vmem:[%s3725_s1 + $0x10] sm:$0xff] }
   0x5   :  { %v2361_v12 = vld [vmem:[%s3724_s2 + $0x8] sm:$0xff]  ;;  %v2360_v14 = vld [vmem:[%s3724_s2] sm:$0xff]  ;;  %v2354_v20 = vld [vmem:[%s3726_s0 + $0x10] sm:$0xff] }
   0x6   :  { %435 = vmatpush.bf16.msra.mxu1 %v2366_v2  ;;  %v2345_v13 = vld [vmem:[%s3725_s1 + $0x8] sm:$0xff]  ;;  %v2344_v15 = vld [vmem:[%s3725_s1] sm:$0xff]  ;;  %v2338_v21 = vld [vmem:[%s3726_s0 + $0x10] sm:$0xff] }
   0x7   :  { %210 = vmatpush.bf16.msra.mxu0 %v2350_v3  ;;  %v2352_v16 = vld [vmem:[%s3726_s0] sm:$0xff]  ;;  %v2353_v18 = vld [vmem:[%s3726_s0 + $0x8] sm:$0xff]  ;;  %v2355_v22 = vld [vmem:[%s3726_s0 + $0x18] sm:$0xff] }
   0x8   :  { %v2336_v17 = vld [vmem:[%s3726_s0] sm:$0xff]  ;;  %v2337_v19 = vld [vmem:[%s3726_s0 + $0x8] sm:$0xff]  ;;  %v2339_v23 = vld [vmem:[%s3726_s0 + $0x18] sm:$0xff] }
   0x9   :  { %v2356_v24 = vld [vmem:[%s3726_s0 + $0x20] sm:$0xff]  ;;  %v2198_v26 = vld [vmem:[%s3727_s5 + $0xa8] sm:$0xf]  ;;  %v2414_v27 = vld [vmem:[%s3727_s5 + $0xb0] sm:$0xf0] }
   0xa   :  { %436 = vmatpush.bf16.msra.mxu1 %v2365_v4  ;;  %v2340_v25 = vld [vmem:[%s3726_s0 + $0x20] sm:$0xff]  ;;  %v2199_v28 = vor.u32 %v2414_v27, %v2198_v26  ;;  %v2413_v29 = vld [vmem:[%s3727_s5 + $0xac] sm:$0xf]  ;;  %v2200_v30 = vld [vmem:[%s3727_s5 + $0xb4] sm:$0xf0] }
   0xb   :  { %211 = vmatpush.bf16.msra.mxu0 %v2349_v5  ;;  %v2206_v31 = vld [vmem:[%s3727_s5 + $0xb0] sm:$0xf]  ;;  %v2203_v32 = vor.u32 %v2413_v29, %v2200_v30  ;;  %v2415_v33 = vld [vmem:[%s3727_s5 + $0xb8] sm:$0xf0]  ;;  %v2410_v38 = vld [vmem:[%s3727_s5 + $0x94] sm:$0xf] }
   0xc   :  { %v2186_v34 = vld [vmem:[%s3727_s5 + $0x90] sm:$0xf]  ;;  %v2411_v35 = vld [vmem:[%s3727_s5 + $0x98] sm:$0xf0]  ;;  %758 = vmatpush.bf16.msra.mxu2 %v2199_v28  ;;  %v2207_v36 = vor.u32 %v2415_v33, %v2206_v31  ;;  %v2188_v39 = vld [vmem:[%s3727_s5 + $0x9c] sm:$0xf0] }
   0xd   :  { %v2187_v37 = vor.u32 %v2411_v35, %v2186_v34  ;;  %v2194_v40 = vld [vmem:[%s3727_s5 + $0x98] sm:$0xf]  ;;  %807 = vmatpush.bf16.msra.mxu3 %v2203_v32  ;;  %v2191_v41 = vor.u32 %v2410_v38, %v2188_v39  ;;  %v2412_v42 = vld [vmem:[%s3727_s5 + $0xa0] sm:$0xf0]  ;;  %v2294_v43 = vld [vmem:[%s3728_s4 + $0xa8] sm:$0xf] }
   0xe   :  { %437 = vmatpush.bf16.msra.mxu1 %v2364_v6  ;;  %v2390_v44 = vld [vmem:[%s3728_s4 + $0xb0] sm:$0xf0]  ;;  %v2195_v45 = vor.u32 %v2412_v42, %v2194_v40  ;;  %v2357_v47 = vld [vmem:[%s3726_s0 + $0x28] sm:$0xff]  ;;  %v2174_v49 = vld [vmem:[%s3727_s5 + $0x78] sm:$0xf] }
   0xf   :  { %212 = vmatpush.bf16.msra.mxu0 %v2348_v7  ;;  %v2295_v46 = vor.u32 %v2390_v44, %v2294_v43  ;;  %v2341_v48 = vld [vmem:[%s3726_s0 + $0x28] sm:$0xff]  ;;  %v2408_v50 = vld [vmem:[%s3727_s5 + $0x80] sm:$0xf0]  ;;  %v2407_v51 = vld [vmem:[%s3727_s5 + $0x7c] sm:$0xf] }
  0x10   :  { %759 = vmatpush.bf16.msra.mxu2 %v2187_v37  ;;  %v2175_v52 = vor.u32 %v2408_v50, %v2174_v49  ;;  %v2176_v53 = vld [vmem:[%s3727_s5 + $0x84] sm:$0xf0]  ;;  %v2182_v54 = vld [vmem:[%s3727_s5 + $0x80] sm:$0xf]  ;;  %v2409_v55 = vld [vmem:[%s3727_s5 + $0x88] sm:$0xf0] }
  0x11   :  { %808 = vmatpush.bf16.msra.mxu3 %v2191_v41  ;;  %v2179_v56 = vor.u32 %v2407_v51, %v2176_v53  ;;  %v2183_v57 = vor.u32 %v2409_v55, %v2182_v54  ;;  %v2282_v58 = vld [vmem:[%s3728_s4 + $0x90] sm:$0xf]  ;;  %v2387_v59 = vld [vmem:[%s3728_s4 + $0x98] sm:$0xf0]  ;;  %v2162_v60 = vld [vmem:[%s3727_s5 + $0x60] sm:$0xf] }
  0x12   :  { %438 = vmatpush.bf16.msra.mxu1 %v2363_v8  ;;  %v2283_v61 = vor.u32 %v2387_v59, %v2282_v58  ;;  %v2405_v62 = vld [vmem:[%s3727_s5 + $0x68] sm:$0xf0]  ;;  %v2404_v63 = vld [vmem:[%s3727_s5 + $0x64] sm:$0xf]  ;;  %v2164_v0 = vld [vmem:[%s3727_s5 + $0x6c] sm:$0xf0] }
  0x13   :  { %213 = vmatpush.bf16.msra.mxu0 %v2347_v9  ;;  %v2163_v1 = vor.u32 %v2405_v62, %v2162_v60  ;;  %v2167_v2 = vor.u32 %v2404_v63, %v2164_v0  ;;  %v2170_v3 = vld [vmem:[%s3727_s5 + $0x68] sm:$0xf]  ;;  %v2406_v4 = vld [vmem:[%s3727_s5 + $0x70] sm:$0xf0]  ;;  %v2270_v6 = vld [vmem:[%s3728_s4 + $0x78] sm:$0xf] }
  0x14   :  { %760 = vmatpush.bf16.msra.mxu2 %v2175_v52  ;;  %v2171_v5 = vor.u32 %v2406_v4, %v2170_v3  ;;  %v2384_v7 = vld [vmem:[%s3728_s4 + $0x80] sm:$0xf0]  ;;  %v2150_v8 = vld [vmem:[%s3727_s5 + $0x48] sm:$0xf]  ;;  %v2140_v26 = vld [vmem:[%s3727_s5 + $0x3c] sm:$0xf0] }
  0x15   :  { %809 = vmatpush.bf16.msra.mxu3 %v2179_v56  ;;  %v2271_v9 = vor.u32 %v2384_v7, %v2270_v6  ;;  %v2146_v27 = vld [vmem:[%s3727_s5 + $0x38] sm:$0xf]  ;;  %v2400_v28 = vld [vmem:[%s3727_s5 + $0x40] sm:$0xf0]  ;;  %v2342_v29 = vld [vmem:[%s3726_s0 + $0x30] sm:$0xff] }
  0x16   :  { %439 = vmatpush.bf16.msra.mxu1 %v2362_v10  ;;  %v2402_v10 = vld [vmem:[%s3727_s5 + $0x50] sm:$0xf0]  ;;  %v2147_v31 = vor.u32 %v2400_v28, %v2146_v27  ;;  %v2246_v32 = vld [vmem:[%s3728_s4 + $0x48] sm:$0xf]  ;;  %v2126_v35 = vld [vmem:[%s3727_s5 + $0x18] sm:$0xf] }
  0x17   :  { %214 = vmatpush.bf16.msra.mxu0 %v2346_v11  ;;  %v2401_v11 = vld [vmem:[%s3727_s5 + $0x4c] sm:$0xf]  ;;  %v2378_v33 = vld [vmem:[%s3728_s4 + $0x50] sm:$0xf0]  ;;  %v2395_v37 = vld [vmem:[%s3727_s5 + $0x1c] sm:$0xf] }
  0x18   :  { %761 = vmatpush.bf16.msra.mxu2 %v2163_v1  ;;  %v2247_v34 = vor.u32 %v2378_v33, %v2246_v32  ;;  %v2128_v39 = vld [vmem:[%s3727_s5 + $0x24] sm:$0xf0]  ;;  %v2134_v40 = vld [vmem:[%s3727_s5 + $0x20] sm:$0xf]  ;;  %v2397_v41 = vld [vmem:[%s3727_s5 + $0x28] sm:$0xf0] }
  0x19   :  { %810 = vmatpush.bf16.msra.mxu3 %v2167_v2  ;;  %v2131_v42 = vor.u32 %v2395_v37, %v2128_v39  ;;  %v2135_v43 = vor.u32 %v2397_v41, %v2134_v40  ;;  %v2234_v44 = vld [vmem:[%s3728_s4 + $0x30] sm:$0xf]  ;;  %v2392_v49 = vld [vmem:[%s3727_s5 + $0x4] sm:$0xf]  ;;  %v2122_v52 = vld [vmem:[%s3727_s5 + $0x8] sm:$0xf] }
  0x1a   :  { %440 = vmatpush.bf16.msra.mxu1 %v2361_v12  ;;  %v2152_v12 = vld [vmem:[%s3727_s5 + $0x54] sm:$0xf0]  ;;  %v2116_v51 = vld [vmem:[%s3727_s5 + $0xc] sm:$0xf0]  ;;  %v2394_v53 = vld [vmem:[%s3727_s5 + $0x10] sm:$0xf0] }
  0x1b   :  { %215 = vmatpush.bf16.msra.mxu0 %v2345_v13  ;;  %v2151_v13 = vor.u32 %v2402_v10, %v2150_v8  ;;  %v2119_v54 = vor.u32 %v2392_v49, %v2116_v51  ;;  %v2123_v55 = vor.u32 %v2394_v53, %v2122_v52  ;;  %v2222_v56 = vld [vmem:[%s3728_s4 + $0x18] sm:$0xf]  ;;  %v2389_v59 = vld [vmem:[%s3728_s4 + $0xac] sm:$0xf]  ;;  %v2386_v3 = vld [vmem:[%s3728_s4 + $0x94] sm:$0xf] }
  0x1c   :  { %v2296_v60 = vld [vmem:[%s3728_s4 + $0xb4] sm:$0xf0]  ;;  %v2369_v63 = vld [vmem:[%s3728_s4 + $0x8] sm:$0xf0]  ;;  %v2284_v4 = vld [vmem:[%s3728_s4 + $0x9c] sm:$0xf0] }
  0x1d   :  { %762 = vmatpush.bf16.msra.mxu2 %v2151_v13  ;;  %v2299_v62 = vor.u32 %v2389_v59, %v2296_v60  ;;  %v2359_v1 = vld [vmem:[%s3726_s0 + $0x38] sm:$0xff]  ;;  %v2272_v13 = vld [vmem:[%s3728_s4 + $0x84] sm:$0xf0]  ;;  %v2388_v28 = vld [vmem:[%s3728_s4 + $0xa0] sm:$0xf0] }
  0x1e   :  { %441 = vmatpush.bf16.msra.mxu1 %v2360_v14  ;;  %v2158_v14 = vld [vmem:[%s3727_s5 + $0x50] sm:$0xf]  ;;  %v2343_v2 = vld [vmem:[%s3726_s0 + $0x38] sm:$0xff]  ;;  %v2385_v40 = vld [vmem:[%s3728_s4 + $0x88] sm:$0xf0] }
  0x1f   :  { %216 = vmatpush.bf16.msra.mxu0 %v2344_v15  ;;  %v2403_v15 = vld [vmem:[%s3727_s5 + $0x58] sm:$0xf0]  ;;  %v2248_v37 = vld [vmem:[%s3728_s4 + $0x54] sm:$0xf0]  ;;  %v2236_v49 = vld [vmem:[%s3728_s4 + $0x3c] sm:$0xf0] }
  0x20   :  { %v2382_v52 = vld [vmem:[%s3728_s4 + $0x70] sm:$0xf0]  ;;  %v2371_v60 = vld [vmem:[%s3728_s4 + $0x1c] sm:$0xf] }
  0x21   :  { %442 = vmatmul.bf16.vlgmr.msra.gmra.mxu1 %v2352_v16  ;;  %v2258_v16 = vld [vmem:[%s3728_s4 + $0x60] sm:$0xf] }
  0x22   :  { %217 = vmatmul.bf16.vlgmr.msra.gmra.mxu0 %v2336_v17  ;;  %1033 = vmatpush.bf16.msrb.mxu1 %v2295_v46  ;;  %v2155_v17 = vor.u32 %v2401_v11, %v2152_v12  ;;  %v2383_v12 = vld [vmem:[%s3728_s4 + $0x7c] sm:$0xf] }
  0x23   :  { %856 = vmatpush.bf16.msrb.mxu0 %v2207_v36  ;;  %v2396_v36 = vld [vmem:[%s3727_s5 + $0x20] sm:$0xf0] }
  0x24   :  { %811 = vmatpush.bf16.msra.mxu3 %v2155_v17  ;;  %v2127_v38 = vor.u32 %v2396_v36, %v2126_v35  ;;  %v2377_v36 = vld [vmem:[%s3728_s4 + $0x4c] sm:$0xf] }
  0x25   :  { %v2251_v39 = vor.u32 %v2377_v36, %v2248_v37  ;;  %v3138_v36 = vld [vmem:[%s3729_s6] sm:$0x7] }
  0x26   :  { %1034 = vmatpush.bf16.msrb.mxu1 %v2283_v61  ;;  %v2210_v61 = vld [vmem:[%s3728_s4] sm:$0xf]  ;;  %v3143_v37 = vperm.slane %v3138_v36, 0 }
  0x27   :  { %857 = vmatpush.bf16.msrb.mxu0 %v2195_v45  ;;  %v2375_v45 = vld [vmem:[%s3728_s4 + $0x38] sm:$0xf0]  ;;  %v2211_v0 = vor.u32 %v2369_v63, %v2210_v61  ;;  %v2224_v61 = vld [vmem:[%s3728_s4 + $0x24] sm:$0xf0] }
  0x28   :  { %v2235_v46 = vor.u32 %v2375_v45, %v2234_v44  ;;  %v2227_v63 = vor.u32 %v2371_v60, %v2224_v61 }
  0x2a   :  { %1035 = vmatpush.bf16.msrb.mxu1 %v2271_v9 }
  0x2b   :  { %858 = vmatpush.bf16.msrb.mxu0 %v2183_v57  ;;  %v2372_v57 = vld [vmem:[%s3728_s4 + $0x20] sm:$0xf0] }
  0x2c   :  { %v2223_v58 = vor.u32 %v2372_v57, %v2222_v56 }
  0x2f   :  { %859 = vmatpush.bf16.msrb.mxu0 %v2171_v5  ;;  %v2287_v5 = vor.u32 %v2386_v3, %v2284_v4 }
  0x31   :  { %447 = vmatmul.bf16.gmra.mxu1 %v2353_v18  ;;  %v2159_v18 = vor.u32 %v2403_v15, %v2158_v14  ;;  %v2302_v14 = vld [vmem:[%s3728_s4 + $0xb0] sm:$0xf]  ;;  %v2275_v15 = vor.u32 %v2383_v12, %v2272_v13  ;;  %v2376_v13 = vld [vmem:[%s3728_s4 + $0x40] sm:$0xf0] }
  0x32   :  { %222 = vmatmul.bf16.gmra.mxu0 %v2337_v19  ;;  %v2381_v19 = vld [vmem:[%s3728_s4 + $0x68] sm:$0xf0] }
  0x33   :  { %860 = vmatpush.bf16.msrb.mxu0 %v2159_v18 }
  0x37   :  { %861 = vmatpush.bf16.msrb.mxu0 %v2147_v31 }
  0x3b   :  { %862 = vmatpush.bf16.msrb.mxu0 %v2135_v43 }
  0x3f   :  { %863 = vmatpush.bf16.msrb.mxu0 %v2123_v55 }
  0x41   :  { %452 = vmatmul.bf16.gmra.mxu1 %v2354_v20  ;;  %v2259_v20 = vor.u32 %v2381_v19, %v2258_v16  ;;  %v2391_v16 = vld [vmem:[%s3728_s4 + $0xb8] sm:$0xf0] }
  0x42   :  { %227 = vmatmul.bf16.gmra.mxu0 %v2338_v21  ;;  %v2358_v21 = vld [vmem:[%s3726_s0 + $0x30] sm:$0xff]  ;;  %v2303_v17 = vor.u32 %v2391_v16, %v2302_v14  ;;  %v2230_v14 = vld [vmem:[%s3728_s4 + $0x20] sm:$0xf] }
  0x43   :  { %1036 = vmatpush.bf16.msrb.mxu1 %v2259_v20 }
  0x47   :  { %1037 = vmatpush.bf16.msrb.mxu1 %v2247_v34 }
  0x4b   :  { %1038 = vmatpush.bf16.msrb.mxu1 %v2235_v46 }
  0x4f   :  { %1039 = vmatpush.bf16.msrb.mxu1 %v2223_v58 }
  0x51   :  { %457 = vmatmul.bf16.gmra.mxu1 %v2355_v22  ;;  %v2138_v22 = vld [vmem:[%s3727_s5 + $0x30] sm:$0xf] }
  0x52   :  { %232 = vmatmul.bf16.gmra.mxu0 %v2339_v23  ;;  %v2399_v23 = vld [vmem:[%s3727_s5 + $0x38] sm:$0xf0] }
  0x53   :  { %1040 = vmatpush.bf16.msrb.mxu1 %v2211_v0  ;;  %v2379_v0 = vld [vmem:[%s3728_s4 + $0x58] sm:$0xf0] }
  0x61   :  { %462 = vmatmul.bf16.gmra.mxu1 %v2356_v24  ;;  %v2398_v24 = vld [vmem:[%s3727_s5 + $0x34] sm:$0xf] }
  0x62   :  { %237 = vmatmul.bf16.gmra.mxu0 %v2340_v25  ;;  %v2139_v25 = vor.u32 %v2399_v23, %v2138_v22  ;;  %v2143_v30 = vor.u32 %v2398_v24, %v2140_v26  ;;  %v2380_v24 = vld [vmem:[%s3728_s4 + $0x64] sm:$0xf]  ;;  %v2290_v26 = vld [vmem:[%s3728_s4 + $0x98] sm:$0xf] }
  0x64   :  { %763 = vmatpush.bf16.msra.mxu2 %v2139_v25  ;;  %812 = vmatpush.bf16.msra.mxu3 %v2143_v30  ;;  %v2260_v25 = vld [vmem:[%s3728_s4 + $0x6c] sm:$0xf0] }
  0x65   :  { %v2263_v27 = vor.u32 %v2380_v24, %v2260_v25 }
  0x68   :  { %764 = vmatpush.bf16.msra.mxu2 %v2127_v38  ;;  %813 = vmatpush.bf16.msra.mxu3 %v2131_v42  ;;  %v2278_v38 = vld [vmem:[%s3728_s4 + $0x80] sm:$0xf] }
  0x69   :  { %v2279_v41 = vor.u32 %v2385_v40, %v2278_v38 }
  0x6c   :  { %814 = vmatpush.bf16.msra.mxu3 %v2119_v54 }
  0x70   :  { %1131 = vmatpush.bf16.msrb.mxu3 %v2303_v17 }
  0x71   :  { %467 = vmatmul.bf16.gmra.mxu1 %v2357_v47  ;;  %v2114_v47 = vld [vmem:[%s3727_s5] sm:$0xf] }
  0x72   :  { %242 = vmatmul.bf16.gmra.mxu0 %v2341_v48  ;;  %v2393_v48 = vld [vmem:[%s3727_s5 + $0x8] sm:$0xf0] }
  0x73   :  { %v2115_v50 = vor.u32 %v2393_v48, %v2114_v47  ;;  %v2374_v48 = vld [vmem:[%s3728_s4 + $0x34] sm:$0xf] }
  0x74   :  { %v2239_v51 = vor.u32 %v2374_v48, %v2236_v49 }
  0x75   :  { %765 = vmatpush.bf16.msra.mxu2 %v2115_v50  ;;  %v2266_v50 = vld [vmem:[%s3728_s4 + $0x68] sm:$0xf] }
  0x76   :  { %v2267_v53 = vor.u32 %v2382_v52, %v2266_v50 }
  0x79   :  { %1082 = vmatpush.bf16.msrb.mxu2 %v2299_v62  ;;  %v2254_v62 = vld [vmem:[%s3728_s4 + $0x50] sm:$0xf] }
  0x7d   :  { %1083 = vmatpush.bf16.msrb.mxu2 %v2287_v5 }
  0x81   :  { %472 = vmatmul.bf16.gmra.mxu1 %v2358_v21  ;;  %1084 = vmatpush.bf16.msrb.mxu2 %v2275_v15  ;;  %v2373_v15 = vld [vmem:[%s3728_s4 + $0x28] sm:$0xf0] }
  0x82   :  { %247 = vmatmul.bf16.gmra.mxu0 %v2342_v29  ;;  %v2291_v29 = vor.u32 %v2388_v28, %v2290_v26 }
  0x84   :  { %1132 = vmatpush.bf16.msrb.mxu3 %v2291_v29 }
  0x85   :  { %1085 = vmatpush.bf16.msrb.mxu2 %v2263_v27 }
  0x88   :  { %1133 = vmatpush.bf16.msrb.mxu3 %v2279_v41 }
  0x89   :  { %1086 = vmatpush.bf16.msrb.mxu2 %v2251_v39 }
  0x8c   :  { %1134 = vmatpush.bf16.msrb.mxu3 %v2267_v53 }
  0x8d   :  { %1087 = vmatpush.bf16.msrb.mxu2 %v2239_v51 }
  0x91   :  { %477 = vmatmul.bf16.gmra.mxu1 %v2359_v1  ;;  %v2255_v1 = vor.u32 %v2379_v0, %v2254_v62  ;;  %1088 = vmatpush.bf16.msrb.mxu2 %v2227_v63 }
  0x92   :  { %252 = vmatmul.bf16.gmra.mxu0 %v2343_v2 }
  0x93   :  { %1135 = vmatpush.bf16.msrb.mxu3 %v2255_v1 }
  0x9e   :  { %v443_v6 = vpop.f32.mrf.mxu1 }
  0x9f   :  { %v218_v7 = vpop.f32.mrf.mxu0 }
  0xa6   :  { %v445_v8 = vpop.f32.mrf.mxu1 }
  0xa7   :  { %v220_v9 = vpop.f32.mrf.mxu0  ;;  %v590_v10 = vpack.c.bf16 %v445_v8, %v443_v6  ;;  %v2368_v8 = vld [vmem:[%s3728_s4 + $0x4] sm:$0xf] }
  0xa8   :  { %v3027_v11 = vpack.c.bf16 %v220_v9, %v218_v7  ;;  %v2212_v9 = vld [vmem:[%s3728_s4 + $0xc] sm:$0xf0] }
  0xa9   :  { %766 = vmatmul.bf16.vlgmr.msra.gmra.mxu2 %v590_v10  ;;  %815 = vmatmul.bf16.vlgmr.msra.gmra.mxu3 %v590_v10  ;;  %v2215_v12 = vor.u32 %v2368_v8, %v2212_v9 }
  0xaa   :  { %864 = vmatmul.bf16.vlgmr.msrb.gmra.mxu0 %v590_v10  ;;  %1041 = vmatmul.bf16.vlgmr.msrb.gmra.mxu1 %v3027_v11  ;;  %v2242_v10 = vld [vmem:[%s3728_s4 + $0x38] sm:$0xf] }
  0xab   :  { %v2243_v16 = vor.u32 %v2376_v13, %v2242_v10  ;;  %1089 = vmatpush.bf16.msrb.mxu2 %v2215_v12 }
  0xad   :  { %1136 = vmatpush.bf16.msrb.mxu3 %v2243_v16 }
  0xae   :  { %v448_v18 = vpop.f32.mrf.mxu1 }
  0xaf   :  { %v223_v19 = vpop.f32.mrf.mxu0 }
  0xb6   :  { %v450_v20 = vpop.f32.mrf.mxu1 }
  0xb7   :  { %v225_v21 = vpop.f32.mrf.mxu0  ;;  %v591_v22 = vpack.c.bf16 %v450_v20, %v448_v18  ;;  %v2218_v20 = vld [vmem:[%s3728_s4 + $0x8] sm:$0xf] }
  0xb8   :  { %v3042_v23 = vpack.c.bf16 %v225_v21, %v223_v19  ;;  %v2231_v19 = vor.u32 %v2373_v15, %v2230_v14  ;;  %v2370_v21 = vld [vmem:[%s3728_s4 + $0x10] sm:$0xf0] }
  0xb9   :  { %771 = vmatmul.bf16.gmra.mxu2 %v591_v22  ;;  %820 = vmatmul.bf16.gmra.mxu3 %v591_v22 }
  0xba   :  { %869 = vmatmul.bf16.gmra.mxu0 %v591_v22  ;;  %1046 = vmatmul.bf16.gmra.mxu1 %v3042_v23  ;;  %v2219_v22 = vor.u32 %v2370_v21, %v2218_v20 }
  0xbb   :  { %1137 = vmatpush.bf16.msrb.mxu3 %v2231_v19 }
  0xbe   :  { %v453_v30 = vpop.f32.mrf.mxu1 }
  0xbf   :  { %v228_v31 = vpop.f32.mrf.mxu0  ;;  %1138 = vmatpush.bf16.msrb.mxu3 %v2219_v22 }
  0xc6   :  { %v455_v32 = vpop.f32.mrf.mxu1 }
  0xc7   :  { %v230_v33 = vpop.f32.mrf.mxu0  ;;  %v592_v34 = vpack.c.bf16 %v455_v32, %v453_v30 }
  0xc8   :  { %v3057_v35 = vpack.c.bf16 %v230_v33, %v228_v31 }
  0xc9   :  { %776 = vmatmul.bf16.gmra.mxu2 %v592_v34  ;;  %825 = vmatmul.bf16.gmra.mxu3 %v592_v34 }
  0xca   :  { %874 = vmatmul.bf16.gmra.mxu0 %v592_v34  ;;  %1051 = vmatmul.bf16.gmra.mxu1 %v3057_v35 }
  0xce   :  { %v458_v42 = vpop.f32.mrf.mxu1 }
  0xcf   :  { %v233_v43 = vpop.f32.mrf.mxu0 }
  0xd6   :  { %v460_v44 = vpop.f32.mrf.mxu1 }
  0xd7   :  { %v235_v45 = vpop.f32.mrf.mxu0  ;;  %v593_v46 = vpack.c.bf16 %v460_v44, %v458_v42 }
  0xd8   :  { %v3072_v47 = vpack.c.bf16 %v235_v45, %v233_v43 }
  0xd9   :  { %781 = vmatmul.bf16.gmra.mxu2 %v593_v46  ;;  %830 = vmatmul.bf16.gmra.mxu3 %v593_v46 }
  0xda   :  { %879 = vmatmul.bf16.gmra.mxu0 %v593_v46  ;;  %1056 = vmatmul.bf16.gmra.mxu1 %v3072_v47 }
  0xde   :  { %v463_v54 = vpop.f32.mrf.mxu1 }
  0xdf   :  { %v238_v55 = vpop.f32.mrf.mxu0 }
  0xe6   :  { %v465_v56 = vpop.f32.mrf.mxu1 }
  0xe7   :  { %v240_v57 = vpop.f32.mrf.mxu0  ;;  %v594_v58 = vpack.c.bf16 %v465_v56, %v463_v54 }
  0xe8   :  { %v3087_v59 = vpack.c.bf16 %v240_v57, %v238_v55 }
  0xe9   :  { %786 = vmatmul.bf16.gmra.mxu2 %v594_v58  ;;  %835 = vmatmul.bf16.gmra.mxu3 %v594_v58 }
  0xea   :  { %884 = vmatmul.bf16.gmra.mxu0 %v594_v58  ;;  %1061 = vmatmul.bf16.gmra.mxu1 %v3087_v59 }
  0xee   :  { %v468_v2 = vpop.f32.mrf.mxu1 }
  0xef   :  { %v243_v3 = vpop.f32.mrf.mxu0 }
  0xf6   :  { %v470_v4 = vpop.f32.mrf.mxu1 }
  0xf7   :  { %v245_v5 = vpop.f32.mrf.mxu0  ;;  %v595_v6 = vpack.c.bf16 %v470_v4, %v468_v2 }
  0xf8   :  { %v3102_v7 = vpack.c.bf16 %v245_v5, %v243_v3 }
  0xf9   :  { %791 = vmatmul.bf16.gmra.mxu2 %v595_v6  ;;  %840 = vmatmul.bf16.gmra.mxu3 %v595_v6 }
  0xfa   :  { %889 = vmatmul.bf16.gmra.mxu0 %v595_v6  ;;  %1066 = vmatmul.bf16.gmra.mxu1 %v3102_v7 }
  0xfe   :  { %v473_v17 = vpop.f32.mrf.mxu1 }
  0xff   :  { %v248_v18 = vpop.f32.mrf.mxu0 }
 0x106   :  { %v475_v24 = vpop.f32.mrf.mxu1 }
 0x107   :  { %v250_v25 = vpop.f32.mrf.mxu0  ;;  %v596_v26 = vpack.c.bf16 %v475_v24, %v473_v17 }
 0x108   :  { %v3129_v27 = vpack.c.bf16 %v250_v25, %v248_v18 }
 0x109   :  { %796 = vmatmul.bf16.gmra.mxu2 %v596_v26  ;;  %845 = vmatmul.bf16.gmra.mxu3 %v596_v26 }
 0x10a   :  { %894 = vmatmul.bf16.gmra.mxu0 %v596_v26  ;;  %1071 = vmatmul.bf16.gmra.mxu1 %v3129_v27 }
 0x10e   :  { %v478_v28 = vpop.f32.mrf.mxu1 }
 0x10f   :  { %v253_v29 = vpop.f32.mrf.mxu0 }
 0x116   :  { %v480_v30 = vpop.f32.mrf.mxu1 }
 0x117   :  { %v255_v31 = vpop.f32.mrf.mxu0  ;;  %v597_v32 = vpack.c.bf16 %v480_v30, %v478_v28 }
 0x118   :  { %v3132_v33 = vpack.c.bf16 %v255_v31, %v253_v29 }
 0x119   :  { %801 = vmatmul.bf16.gmra.mxu2 %v597_v32  ;;  %850 = vmatmul.bf16.gmra.mxu3 %v597_v32 }
 0x11a   :  { %899 = vmatmul.bf16.gmra.mxu0 %v597_v32  ;;  %1076 = vmatmul.bf16.gmra.mxu1 %v3132_v33 }
 0x127   :  { %v1042_v34 = vpop.f32.mrf.mxu1 }
 0x129   :  { %1090 = vmatmul.bf16.vlgmr.msrb.gmra.mxu2 %v3027_v11  ;;  %1139 = vmatmul.bf16.vlgmr.msrb.gmra.mxu3 %v3027_v11 }
 0x12c   :  { %v767_v38 = vpop.f32.mrf.mxu2  ;;  %v3145_v39 = vpop.f32.mrf.mxu3 }
 0x12d   :  { %v1043_v40 = vadd.f32 %v1042_v34, %v767_v38 }
 0x12f   :  { %v1188_v41 = vadd.f32 %v3143_v37, %v1043_v40  ;;  %v1044_v42 = vpop.f32.mrf.mxu1 }
 0x131   :  { %v2304_v43 = vmul.f32 -1.442695, %v1188_v41 }
 0x133   :  { %2549 = vpow2.f32 %v2304_v43 }
 0x134   :  { %v769_v44 = vpop.f32.mrf.mxu2  ;;  %v3148_v45 = vpop.f32.mrf.mxu3 }
 0x135   :  { %v1045_v46 = vadd.f32 %v1044_v42, %v769_v44 }
 0x137   :  { %v1191_v48 = vadd.f32 %v3143_v37, %v1045_v46  ;;  %v1047_v49 = vpop.f32.mrf.mxu1 }
 0x139   :  { %v2550_v11 = vpop.eup %2549  ;;  %v2305_v50 = vmul.f32 -1.442695, %v1191_v48  ;;  %1095 = vmatmul.bf16.gmra.mxu2 %v3042_v23  ;;  %1144 = vmatmul.bf16.gmra.mxu3 %v3042_v23 }
 0x13a   :  { %v1284_v51 = vadd.f32 1.0, %v2550_v11 }
 0x13b   :  { %2551 = vpow2.f32 %v2305_v50 }
 0x13c   :  { %2553 = vrcp.f32 %v1284_v51  ;;  %v772_v52 = vpop.f32.mrf.mxu2  ;;  %v3153_v53 = vpop.f32.mrf.mxu3  ;;  %vm1305_vm1 = vweird.f32 %v1284_v51  ;;  %v1309_v17 = vand.u32 2147483647, %v1284_v51  ;;  %v1311_v18 = vand.u32 2147483648, %v1284_v51 }
 0x13d   :  { %v1048_v54 = vadd.f32 %v1047_v49, %v772_v52 }
 0x13e   :  { %vm1310_vm5 = vcmp.eq.f32.partialorder %v1309_v17, 8.507059e+37  ;;  %v1312_v31 = vor.u32 1.1754944e-38, %v1311_v18 }
 0x13f   :  { %v1194_v55 = vadd.f32 %v3143_v37, %v1048_v54  ;;  %v1049_v56 = vpop.f32.mrf.mxu1 }
 0x141   :  { %v2552_v57 = vpop.eup %2551  ;;  %v2306_v58 = vmul.f32 -1.442695, %v1194_v55 }
 0x142   :  { %v2554_v60 = vpop.eup %2553  ;;  %v1285_v61 = vadd.f32 1.0, %v2552_v57 }
 0x143   :  { %v1301_v62 = vmul.f32 %v2554_v60, %v1284_v51  ;;  %2555 = vpow2.f32 %v2306_v58  ;;  %vm1306_vm0 = vweird.f32 %v2554_v60 }
 0x144   :  { %2557 = vrcp.f32 %v1285_v61  ;;  %v774_v63 = vpop.f32.mrf.mxu2  ;;  %v3156_v0 = vpop.f32.mrf.mxu3  ;;  %v1326_v19 = vand.u32 2147483648, %v1285_v61  ;;  %vm3167_vm3 = vmor %vm1305_vm1, %vm1306_vm0  ;;  %vm1320_vm4 = vweird.f32 %v1285_v61 }
 0x145   :  { %v1302_v23 = vsub.f32 1.0, %v1301_v62  ;;  %v1050_v1 = vadd.f32 %v1049_v56, %v774_v63 }
 0x146   :  { %v1327_v32 = vor.u32 1.1754944e-38, %v1326_v19 }
 0x147   :  { %v1197_v2 = vadd.f32 %v3143_v37, %v1050_v1  ;;  %v1052_v3 = vpop.f32.mrf.mxu1  ;;  %v1303_v5 = vmul.f32 %v2554_v60, %v1302_v23 }
 0x149   :  { %v2556_v4 = vpop.eup %2555  ;;  %v2307_v6 = vmul.f32 -1.442695, %v1197_v2  ;;  %1100 = vmatmul.bf16.gmra.mxu2 %v3057_v35  ;;  %1149 = vmatmul.bf16.gmra.mxu3 %v3057_v35  ;;  %v1304_v14 = vadd.f32 %v2554_v60, %v1303_v5  ;;  %v1324_v35 = vand.u32 2147483647, %v1285_v61 }
 0x14a   :  { %v2558_v8 = vpop.eup %2557  ;;  %v3161_v9 = vadd.f32 1.0, %v2556_v4 }
 0x14b   :  { %v1316_v10 = vmul.f32 %v2558_v8, %v1285_v61  ;;  %2559 = vpow2.f32 %v2307_v6  ;;  %vm1321_vm2 = vweird.f32 %v2558_v8  ;;  %v1308_v26 = vsel %vm3167_vm3, %v2554_v60, %v1304_v14 }
 0x14c   :  { %2561 = vrcp.f32 %v3161_v9  ;;  %v777_v12 = vpop.f32.mrf.mxu2  ;;  %v3164_v13 = vpop.f32.mrf.mxu3  ;;  %vm1322_vm6 = vmor %vm1320_vm4, %vm1321_vm2  ;;  %vm1325_vm7 = vcmp.eq.f32.partialorder %v1324_v35, 8.507059e+37  ;;  %v1313_v41 = vsel %vm1310_vm5, %v1312_v31, %v1308_v26  ;;  %vm1335_vm9 = vweird.f32 %v3161_v9 }
 0x14d   :  { %v1317_v15 = vsub.f32 1.0, %v1316_v10  ;;  %v1053_v16 = vadd.f32 %v1052_v3, %v777_v12  ;;  %v1341_v23 = vand.u32 2147483648, %v3161_v9 }
 0x14f   :  { %v1318_v20 = vmul.f32 %v2558_v8, %v1317_v15  ;;  %v1200_v21 = vadd.f32 %v3143_v37, %v1053_v16  ;;  %v1054_v22 = vpop.f32.mrf.mxu1  ;;  %v1342_v15 = vor.u32 1.1754944e-38, %v1341_v23 }
 0x151   :  { %v2560_v25 = vpop.eup %2559  ;;  %v1319_v28 = vadd.f32 %v2558_v8, %v1318_v20  ;;  %v2308_v29 = vmul.f32 -1.442695, %v1200_v21 }
 0x152   :  { %v3173_v30 = vpop.eup %2561  ;;  %v1287_v34 = vadd.f32 1.0, %v2560_v25 }
 0x153   :  { %v1323_v38 = vsel %vm1322_vm6, %v2558_v8, %v1319_v28  ;;  %v1331_v40 = vmul.f32 %v3173_v30, %v3161_v9  ;;  %2563 = vpow2.f32 %v2308_v29  ;;  %vm1336_vm8 = vweird.f32 %v3173_v30 }
 0x154   :  { %v1328_v42 = vsel %vm1325_vm7, %v1327_v32, %v1323_v38  ;;  %2565 = vrcp.f32 %v1287_v34  ;;  %v779_v43 = vpop.f32.mrf.mxu2  ;;  %v3177_v44 = vpop.f32.mrf.mxu3  ;;  %v1356_v1 = vand.u32 2147483648, %v1287_v34  ;;  %v1354_v3 = vand.u32 2147483647, %v1287_v34  ;;  %vm3197_vm11 = vmor %vm1335_vm9, %vm1336_vm8 }
 0x155   :  { %v2419_v46 = vpack.c.bf16 %v1328_v42, %v1313_v41  ;;  %v1332_v48 = vsub.f32 1.0, %v1331_v40  ;;  %v1055_v49 = vadd.f32 %v1054_v22, %v779_v43  ;;  %vm1350_vm12 = vweird.f32 %v1287_v34 }
 0x156   :  { %v1357_v16 = vor.u32 1.1754944e-38, %v1356_v1  ;;  %vm1355_vm15 = vcmp.eq.f32.partialorder %v1354_v3, 8.507059e+37 }
 0x157   :  { %2420 = vst [vmem:[%s3730_s7] sm:$0xff] %v2419_v46   ;;  %v1203_v11 = vadd.f32 %v3143_v37, %v1055_v49  ;;  %v1057_v50 = vpop.f32.mrf.mxu1  ;;  %v1333_v52 = vmul.f32 %v3173_v30, %v1332_v48 }
 0x159   :  { %v2564_v51 = vpop.eup %2563  ;;  %v2309_v54 = vmul.f32 -1.442695, %v1203_v11  ;;  %1105 = vmatmul.bf16.gmra.mxu2 %v3072_v47  ;;  %1154 = vmatmul.bf16.gmra.mxu3 %v3072_v47  ;;  %v1334_v61 = vadd.f32 %v3173_v30, %v1333_v52  ;;  %v1339_v47 = vand.u32 2147483647, %v3161_v9 }
 0x15a   :  { %v2566_v55 = vpop.eup %2565  ;;  %v3186_v56 = vadd.f32 1.0, %v2564_v51 }
 0x15b   :  { %v1346_v57 = vmul.f32 %v2566_v55, %v1287_v34  ;;  %2567 = vpow2.f32 %v2309_v54  ;;  %vm1351_vm10 = vweird.f32 %v2566_v55  ;;  %v1338_v10 = vsel %vm3197_vm11, %v3173_v30, %v1334_v61 }
 0x15c   :  { %2569 = vrcp.f32 %v3186_v56  ;;  %v782_v58 = vpop.f32.mrf.mxu2  ;;  %v3189_v60 = vpop.f32.mrf.mxu3  ;;  %vm1340_vm13 = vcmp.eq.f32.partialorder %v1339_v47, 8.507059e+37  ;;  %vm1352_vm14 = vmor %vm1350_vm12, %vm1351_vm10  ;;  %vm1365_vm1 = vweird.f32 %v3186_v56  ;;  %v1371_v49 = vand.u32 2147483648, %v3186_v56 }
 0x15d   :  { %v1347_v62 = vsub.f32 1.0, %v1346_v57  ;;  %v1058_v63 = vadd.f32 %v1057_v50, %v782_v58  ;;  %v1343_v20 = vsel %vm1340_vm13, %v1342_v15, %v1338_v10 }
 0x15f   :  { %v1348_v2 = vmul.f32 %v2566_v55, %v1347_v62  ;;  %v1206_v4 = vadd.f32 %v3143_v37, %v1058_v63  ;;  %v1059_v5 = vpop.f32.mrf.mxu1  ;;  %v1372_v63 = vor.u32 1.1754944e-38, %v1371_v49 }
 0x161   :  { %v2568_v8 = vpop.eup %2567  ;;  %v1349_v12 = vadd.f32 %v2566_v55, %v1348_v2  ;;  %v2310_v14 = vmul.f32 -1.442695, %v1206_v4 }
 0x162   :  { %v3204_v9 = vpop.eup %2569  ;;  %v1289_v17 = vadd.f32 1.0, %v2568_v8 }
 0x163   :  { %v1353_v18 = vsel %vm1352_vm14, %v2566_v55, %v1349_v12  ;;  %v1361_v19 = vmul.f32 %v3204_v9, %v3186_v56  ;;  %2571 = vpow2.f32 %v2310_v14  ;;  %vm1366_vm0 = vweird.f32 %v3204_v9 }
 0x164   :  { %v1358_v35 = vsel %vm1355_vm15, %v1357_v16, %v1353_v18  ;;  %2573 = vrcp.f32 %v1289_v17  ;;  %v784_v21 = vpop.f32.mrf.mxu2  ;;  %v3208_v22 = vpop.f32.mrf.mxu3  ;;  %v1386_v11 = vand.u32 2147483648, %v1289_v17  ;;  %v1384_v51 = vand.u32 2147483647, %v1289_v17  ;;  %vm3228_vm3 = vmor %vm1365_vm1, %vm1366_vm0 }
 0x165   :  { %v2424_v24 = vpack.c.bf16 %v1358_v35, %v1343_v20  ;;  %v1362_v25 = vsub.f32 1.0, %v1361_v19  ;;  %v1060_v26 = vadd.f32 %v1059_v5, %v784_v21  ;;  %vm1380_vm4 = vweird.f32 %v1289_v17 }
 0x166   :  { %v1387_v47 = vor.u32 1.1754944e-38, %v1386_v11  ;;  %vm1385_vm7 = vcmp.eq.f32.partialorder %v1384_v51, 8.507059e+37 }
 0x167   :  { %2528 = vst [vmem:[%s3730_s7 + $0x8] sm:$0xff] %v2424_v24   ;;  %v1209_v28 = vadd.f32 %v3143_v37, %v1060_v26  ;;  %v1062_v29 = vpop.f32.mrf.mxu1  ;;  %v1363_v31 = vmul.f32 %v3204_v9, %v1362_v25 }
 0x169   :  { %v2572_v30 = vpop.eup %2571  ;;  %v2311_v32 = vmul.f32 -1.442695, %v1209_v28  ;;  %1110 = vmatmul.bf16.gmra.mxu2 %v3087_v59  ;;  %1159 = vmatmul.bf16.gmra.mxu3 %v3087_v59  ;;  %v1364_v43 = vadd.f32 %v3204_v9, %v1363_v31  ;;  %v1369_v59 = vand.u32 2147483647, %v3186_v56 }
 0x16a   :  { %v2574_v34 = vpop.eup %2573  ;;  %v3217_v38 = vadd.f32 1.0, %v2572_v30 }
 0x16b   :  { %v1376_v40 = vmul.f32 %v2574_v34, %v1289_v17  ;;  %2575 = vpow2.f32 %v2311_v32  ;;  %vm1381_vm2 = vweird.f32 %v2574_v34  ;;  %v1368_v58 = vsel %vm3228_vm3, %v3204_v9, %v1364_v43 }
 0x16c   :  { %2577 = vrcp.f32 %v3217_v38  ;;  %v787_v41 = vpop.f32.mrf.mxu2  ;;  %v3220_v42 = vpop.f32.mrf.mxu3  ;;  %vm1370_vm5 = vcmp.eq.f32.partialorder %v1369_v59, 8.507059e+37  ;;  %vm1382_vm6 = vmor %vm1380_vm4, %vm1381_vm2  ;;  %vm1395_vm9 = vweird.f32 %v3217_v38  ;;  %v1401_v28 = vand.u32 2147483648, %v3217_v38 }
 0x16d   :  { %v1377_v46 = vsub.f32 1.0, %v1376_v40  ;;  %v1063_v48 = vadd.f32 %v1062_v29, %v787_v41  ;;  %v1373_v3 = vsel %vm1370_vm5, %v1372_v63, %v1368_v58 }
 0x16e   :  { %v1402_v59 = vor.u32 1.1754944e-38, %v1401_v28 }
 0x16f   :  { %v1378_v50 = vmul.f32 %v2574_v34, %v1377_v46  ;;  %v1212_v52 = vadd.f32 %v3143_v37, %v1063_v48  ;;  %v1064_v54 = vpop.f32.mrf.mxu1 }
 0x171   :  { %v2576_v57 = vpop.eup %2575  ;;  %v1379_v61 = vadd.f32 %v2574_v34, %v1378_v50  ;;  %v2312_v62 = vmul.f32 -1.442695, %v1212_v52 }
 0x172   :  { %v3235_v56 = vpop.eup %2577  ;;  %v1291_v23 = vadd.f32 1.0, %v2576_v57 }
 0x173   :  { %v1383_v1 = vsel %vm1382_vm6, %v2574_v34, %v1379_v61  ;;  %v1391_v2 = vmul.f32 %v3235_v56, %v3217_v38  ;;  %2579 = vpow2.f32 %v2312_v62  ;;  %vm1396_vm8 = vweird.f32 %v3235_v56 }
 0x174   :  { %v1388_v4 = vsel %vm1385_vm7, %v1387_v47, %v1383_v1  ;;  %2581 = vrcp.f32 %v1291_v23  ;;  %v789_v5 = vpop.f32.mrf.mxu2  ;;  %v3239_v6 = vpop.f32.mrf.mxu3  ;;  %v1416_v29 = vand.u32 2147483648, %v1291_v23  ;;  %v1414_v31 = vand.u32 2147483647, %v1291_v23  ;;  %vm3259_vm11 = vmor %vm1395_vm9, %vm1396_vm8 }
 0x175   :  { %v2429_v8 = vpack.c.bf16 %v1388_v4, %v1373_v3  ;;  %v1392_v10 = vsub.f32 1.0, %v1391_v2  ;;  %v1065_v12 = vadd.f32 %v1064_v54, %v789_v5  ;;  %vm1410_vm12 = vweird.f32 %v1291_v23 }
 0x176   :  { %v1417_v49 = vor.u32 1.1754944e-38, %v1416_v29  ;;  %vm1415_vm15 = vcmp.eq.f32.partialorder %v1414_v31, 8.507059e+37 }
 0x177   :  { %2529 = vst [vmem:[%s3730_s7 + $0x10] sm:$0xff] %v2429_v8   ;;  %v1215_v14 = vadd.f32 %v3143_v37, %v1065_v12  ;;  %v1067_v9 = vpop.f32.mrf.mxu1  ;;  %v1393_v16 = vmul.f32 %v3235_v56, %v1392_v10 }
 0x179   :  { %v2580_v15 = vpop.eup %2579  ;;  %v2313_v17 = vmul.f32 -1.442695, %v1215_v14  ;;  %1115 = vmatmul.bf16.gmra.mxu2 %v3102_v7  ;;  %1164 = vmatmul.bf16.gmra.mxu3 %v3102_v7  ;;  %v1394_v24 = vadd.f32 %v3235_v56, %v1393_v16  ;;  %v1399_v7 = vand.u32 2147483647, %v3217_v38  ;;  %v3289_v16 = vpop.f32.mrf.mxu0 }
 0x17a   :  { %v2582_v18 = vpop.eup %2581  ;;  %v3248_v19 = vadd.f32 1.0, %v2580_v15 }
 0x17b   :  { %v1406_v20 = vmul.f32 %v2582_v18, %v1291_v23  ;;  %2583 = vpow2.f32 %v2313_v17  ;;  %vm1411_vm10 = vweird.f32 %v2582_v18  ;;  %v1398_v43 = vsel %vm3259_vm11, %v3235_v56, %v1394_v24 }
 0x17c   :  { %2585 = vrcp.f32 %v3248_v19  ;;  %v792_v35 = vpop.f32.mrf.mxu2  ;;  %v3251_v21 = vpop.f32.mrf.mxu3  ;;  %vm1400_vm13 = vcmp.eq.f32.partialorder %v1399_v7, 8.507059e+37  ;;  %vm1412_vm14 = vmor %vm1410_vm12, %vm1411_vm10  ;;  %vm1425_vm1 = vweird.f32 %v3248_v19 }
 0x17d   :  { %v1407_v25 = vsub.f32 1.0, %v1406_v20  ;;  %v1068_v26 = vadd.f32 %v1067_v9, %v792_v35  ;;  %v1403_v52 = vsel %vm1400_vm13, %v1402_v59, %v1398_v43  ;;  %v1431_v9 = vand.u32 2147483648, %v3248_v19 }
 0x17f   :  { %v1408_v30 = vmul.f32 %v2582_v18, %v1407_v25  ;;  %v1218_v32 = vadd.f32 %v3143_v37, %v1068_v26  ;;  %v1069_v34 = vpop.f32.mrf.mxu1  ;;  %v1432_v29 = vor.u32 1.1754944e-38, %v1431_v9 }
 0x181   :  { %v2584_v41 = vpop.eup %2583  ;;  %v1409_v46 = vadd.f32 %v2582_v18, %v1408_v30  ;;  %v2314_v48 = vmul.f32 -1.442695, %v1218_v32 }
 0x182   :  { %v3266_v38 = vpop.eup %2585  ;;  %v1293_v11 = vadd.f32 1.0, %v2584_v41 }
 0x183   :  { %v1413_v50 = vsel %vm1412_vm14, %v2582_v18, %v1409_v46  ;;  %v1421_v51 = vmul.f32 %v3266_v38, %v3248_v19  ;;  %2587 = vpow2.f32 %v2314_v48  ;;  %vm1426_vm0 = vweird.f32 %v3266_v38 }
 0x184   :  { %v1418_v54 = vsel %vm1415_vm15, %v1417_v49, %v1413_v50  ;;  %2589 = vrcp.f32 %v1293_v11  ;;  %v794_v55 = vpop.f32.mrf.mxu2  ;;  %v3270_v57 = vpop.f32.mrf.mxu3  ;;  %v1446_v15 = vand.u32 2147483648, %v1293_v11  ;;  %v1444_v18 = vand.u32 2147483647, %v1293_v11  ;;  %vm3292_vm3 = vmor %vm1425_vm1, %vm1426_vm0 }
 0x185   :  { %v2434_v58 = vpack.c.bf16 %v1418_v54, %v1403_v52  ;;  %v1422_v61 = vsub.f32 1.0, %v1421_v51  ;;  %v1070_v62 = vadd.f32 %v1069_v34, %v794_v55  ;;  %vm1440_vm4 = vweird.f32 %v1293_v11  ;;  %v3309_v51 = vpop.f32.mrf.mxu0 }
 0x186   :  { %v1447_v30 = vor.u32 1.1754944e-38, %v1446_v15  ;;  %vm1445_vm7 = vcmp.eq.f32.partialorder %v1444_v18, 8.507059e+37 }
 0x187   :  { %2530 = vst [vmem:[%s3730_s7 + $0x18] sm:$0xff] %v2434_v58   ;;  %v1221_v56 = vadd.f32 %v3143_v37, %v1070_v62  ;;  %v1072_v63 = vpop.f32.mrf.mxu1  ;;  %v1423_v23 = vmul.f32 %v3266_v38, %v1422_v61 }
 0x189   :  { %v2588_v47 = vpop.eup %2587  ;;  %v2315_v1 = vmul.f32 -1.442695, %v1221_v56  ;;  %1120 = vmatmul.bf16.gmra.mxu2 %v3129_v27  ;;  %1169 = vmatmul.bf16.gmra.mxu3 %v3129_v27  ;;  %v1424_v10 = vadd.f32 %v3266_v38, %v1423_v23  ;;  %v1429_v27 = vand.u32 2147483647, %v3248_v19 }
 0x18a   :  { %v2590_v2 = vpop.eup %2589  ;;  %v3279_v3 = vadd.f32 1.0, %v2588_v47 }
 0x18b   :  { %v1436_v4 = vmul.f32 %v2590_v2, %v1293_v11  ;;  %2591 = vpow2.f32 %v2315_v1  ;;  %vm1441_vm2 = vweird.f32 %v2590_v2  ;;  %v1428_v26 = vsel %vm3292_vm3, %v3266_v38, %v1424_v10 }
 0x18c   :  { %2593 = vrcp.f32 %v3279_v3  ;;  %v797_v5 = vpop.f32.mrf.mxu2  ;;  %v3282_v8 = vpop.f32.mrf.mxu3  ;;  %vm1430_vm5 = vcmp.eq.f32.partialorder %v1429_v27, 8.507059e+37  ;;  %vm1442_vm6 = vmor %vm1440_vm4, %vm1441_vm2  ;;  %vm1455_vm9 = vweird.f32 %v3279_v3  ;;  %v1461_v1 = vand.u32 2147483648, %v3279_v3 }
 0x18d   :  { %v1437_v12 = vsub.f32 1.0, %v1436_v4  ;;  %v1073_v14 = vadd.f32 %v1072_v63, %v797_v5  ;;  %v1433_v40 = vsel %vm1430_vm5, %v1432_v29, %v1428_v26  ;;  %v3334_v24 = vpop.f32.mrf.mxu0 }
 0x18f   :  { %v1438_v17 = vmul.f32 %v2590_v2, %v1437_v12  ;;  %v1224_v20 = vadd.f32 %v3143_v37, %v1073_v14  ;;  %v1074_v35 = vpop.f32.mrf.mxu1 }
 0x191   :  { %v2592_v25 = vpop.eup %2591  ;;  %v1439_v7 = vadd.f32 %v2590_v2, %v1438_v17  ;;  %v2316_v19 = vmul.f32 -1.442695, %v1224_v20 }
 0x192   :  { %v3299_v28 = vpop.eup %2593  ;;  %v1295_v31 = vadd.f32 1.0, %v2592_v25 }
 0x193   :  { %v1443_v32 = vsel %vm1442_vm6, %v2590_v2, %v1439_v7  ;;  %v1451_v34 = vmul.f32 %v3299_v28, %v3279_v3  ;;  %2595 = vpow2.f32 %v2316_v19  ;;  %vm1456_vm8 = vweird.f32 %v3299_v28 }
 0x194   :  { %v1448_v41 = vsel %vm1445_vm7, %v1447_v30, %v1443_v32  ;;  %2597 = vrcp.f32 %v1295_v31  ;;  %v799_v43 = vpop.f32.mrf.mxu2  ;;  %v3303_v46 = vpop.f32.mrf.mxu3  ;;  %v1476_v2 = vand.u32 2147483648, %v1295_v31  ;;  %v1474_v5 = vand.u32 2147483647, %v1295_v31  ;;  %vm3325_vm11 = vmor %vm1455_vm9, %vm1456_vm8 }
 0x195   :  { %v2439_v48 = vpack.c.bf16 %v1448_v41, %v1433_v40  ;;  %v1452_v38 = vsub.f32 1.0, %v1451_v34  ;;  %v1075_v59 = vadd.f32 %v1074_v35, %v799_v43  ;;  %vm1470_vm12 = vweird.f32 %v1295_v31 }
 0x196   :  { %v1477_v18 = vor.u32 1.1754944e-38, %v1476_v2  ;;  %vm1475_vm15 = vcmp.eq.f32.partialorder %v1474_v5, 8.507059e+37 }
 0x197   :  { %2531 = vst [vmem:[%s3730_s7 + $0x20] sm:$0xff] %v2439_v48   ;;  %v1227_v49 = vadd.f32 %v3143_v37, %v1075_v59  ;;  %v1077_v11 = vpop.f32.mrf.mxu1  ;;  %v1453_v52 = vmul.f32 %v3299_v28, %v1452_v38 }
 0x199   :  { %v2596_v50 = vpop.eup %2595  ;;  %v2317_v54 = vmul.f32 -1.442695, %v1227_v49  ;;  %1125 = vmatmul.bf16.gmra.mxu2 %v3132_v33  ;;  %1174 = vmatmul.bf16.gmra.mxu3 %v3132_v33  ;;  %v1454_v63 = vadd.f32 %v3299_v28, %v1453_v52  ;;  %v1459_v33 = vand.u32 2147483647, %v3279_v3  ;;  %v1462_v3 = vor.u32 1.1754944e-38, %v1461_v1  ;;  %v3355_v52 = vpop.f32.mrf.mxu0 }
 0x19a   :  { %v2598_v55 = vpop.eup %2597  ;;  %v3314_v58 = vadd.f32 1.0, %v2596_v50  ;;  %v3348_v49 = vperm.slane %v3138_v36, 1 }
 0x19b   :  { %v1466_v61 = vmul.f32 %v2598_v55, %v1295_v31  ;;  %2599 = vpow2.f32 %v2317_v54  ;;  %vm1471_vm10 = vweird.f32 %v2598_v55  ;;  %v1458_v27 = vsel %vm3325_vm11, %v3299_v28, %v1454_v63 }
 0x19c   :  { %2601 = vrcp.f32 %v3314_v58  ;;  %v802_v62 = vpop.f32.mrf.mxu2  ;;  %v3317_v56 = vpop.f32.mrf.mxu3  ;;  %vm1460_vm13 = vcmp.eq.f32.partialorder %v1459_v33, 8.507059e+37  ;;  %vm1472_vm14 = vmor %vm1470_vm12, %vm1471_vm10  ;;  %vm1485_vm0 = vweird.f32 %v3314_v58  ;;  %v1491_v63 = vand.u32 2147483648, %v3314_v58 }
 0x19d   :  { %v1467_v47 = vsub.f32 1.0, %v1466_v61  ;;  %v1078_v23 = vadd.f32 %v1077_v11, %v802_v62  ;;  %v1463_v7 = vsel %vm1460_vm13, %v1462_v3, %v1458_v27  ;;  %v1489_v62 = vand.u32 2147483647, %v3314_v58 }
 0x19f   :  { %v1468_v4 = vmul.f32 %v2598_v55, %v1467_v47  ;;  %v1230_v10 = vadd.f32 %v3143_v37, %v1078_v23  ;;  %v1079_v35 = vpop.f32.mrf.mxu1  ;;  %vm1490_vm5 = vcmp.eq.f32.partialorder %v1489_v62, 8.507059e+37 }
 0x1a1   :  { %v2600_v14 = vpop.eup %2599  ;;  %v1469_v9 = vadd.f32 %v2598_v55, %v1468_v4  ;;  %v2318_v15 = vmul.f32 -1.442695, %v1230_v10 }
 0x1a2   :  { %v3332_v17 = vpop.eup %2601  ;;  %v1297_v20 = vadd.f32 1.0, %v2600_v14  ;;  %v1492_v14 = vor.u32 1.1754944e-38, %v1491_v63 }
 0x1a3   :  { %v1473_v25 = vsel %vm1472_vm14, %v2598_v55, %v1469_v9  ;;  %v1481_v26 = vmul.f32 %v3332_v17, %v3314_v58  ;;  %2603 = vpow2.f32 %v2318_v15  ;;  %vm1486_vm1 = vweird.f32 %v3332_v17 }
 0x1a4   :  { %v1478_v19 = vsel %vm1475_vm15, %v1477_v18, %v1473_v25  ;;  %2605 = vrcp.f32 %v1297_v20  ;;  %v804_v28 = vpop.f32.mrf.mxu2  ;;  %v3338_v29 = vpop.f32.mrf.mxu3  ;;  %v1506_v47 = vand.u32 2147483648, %v1297_v20  ;;  %vm3366_vm3 = vmor %vm1485_vm0, %vm1486_vm1  ;;  %vm1500_vm4 = vweird.f32 %v1297_v20 }
 0x1a5   :  { %v2444_v30 = vpack.c.bf16 %v1478_v19, %v1463_v7  ;;  %v1482_v31 = vsub.f32 1.0, %v1481_v26  ;;  %v1080_v32 = vadd.f32 %v1079_v35, %v804_v28  ;;  %v3383_v19 = vpop.f32.mrf.mxu0 }
 0x1a6   :  { %v1507_v58 = vor.u32 1.1754944e-38, %v1506_v47 }
 0x1a7   :  { %2532 = vst [vmem:[%s3730_s7 + $0x28] sm:$0xff] %v2444_v30   ;;  %v1233_v34 = vadd.f32 %v3143_v37, %v1080_v32  ;;  %v1483_v41 = vmul.f32 %v3332_v17, %v1482_v31  ;;  %v3353_v37 = vperm.slane %v3138_v36, 2  ;;  %v1504_v36 = vand.u32 2147483647, %v1297_v20 }
 0x1a9   :  { %v2604_v40 = vpop.eup %2603  ;;  %v2319_v43 = vmul.f32 -1.442695, %v1233_v34  ;;  %v1484_v54 = vadd.f32 %v3332_v17, %v1483_v41  ;;  %vm1505_vm7 = vcmp.eq.f32.partialorder %v1504_v36, 8.507059e+37 }
 0x1aa   :  { %v2606_v48 = vpop.eup %2605  ;;  %v3345_v38 = vadd.f32 1.0, %v2604_v40 }
 0x1ab   :  { %v1496_v59 = vmul.f32 %v2606_v48, %v1297_v20  ;;  %2607 = vpow2.f32 %v2319_v43  ;;  %vm1501_vm2 = vweird.f32 %v2606_v48  ;;  %v1488_v5 = vsel %vm3366_vm3, %v3332_v17, %v1484_v54 }
 0x1ac   :  { %2609 = vrcp.f32 %v3345_v38  ;;  %v1091_v11 = vpop.f32.mrf.mxu2  ;;  %v1140_v50 = vpop.f32.mrf.mxu3  ;;  %vm1502_vm6 = vmor %vm1500_vm4, %vm1501_vm2  ;;  %v1493_v17 = vsel %vm1490_vm5, %v1492_v14, %v1488_v5  ;;  %vm1515_vm8 = vweird.f32 %v3345_v38  ;;  %v1521_v54 = vand.u32 2147483648, %v3345_v38 }
 0x1ad   :  { %v1497_v55 = vsub.f32 1.0, %v1496_v59  ;;  %v1092_v61 = vadd.f32 %v1091_v11, %v3145_v39  ;;  %v1141_v23 = vadd.f32 %v1140_v50, %v3289_v16  ;;  %v1519_v50 = vand.u32 2147483647, %v3345_v38  ;;  %v3412_v36 = vpop.f32.mrf.mxu0 }
 0x1af   :  { %v1498_v33 = vmul.f32 %v2606_v48, %v1497_v55  ;;  %v1189_v1 = vadd.f32 %v3348_v49, %v1092_v61  ;;  %v1190_v39 = vadd.f32 %v3353_v37, %v1141_v23  ;;  %vm1520_vm13 = vcmp.eq.f32.partialorder %v1519_v50, 8.507059e+37 }
 0x1b1   :  { %v2608_v4 = vpop.eup %2607  ;;  %v1499_v10 = vadd.f32 %v2606_v48, %v1498_v33  ;;  %v2320_v16 = vmul.f32 -1.442695, %v1189_v1  ;;  %1956 = vst [vmem:[%s3731_s9] sm:$0xff] %v1190_v39 }
 0x1b2   :  { %v3374_v12 = vpop.eup %2609  ;;  %v1299_v27 = vadd.f32 1.0, %v2608_v4 }
 0x1b3   :  { %v1503_v9 = vsel %vm1502_vm6, %v2606_v48, %v1499_v10  ;;  %v1511_v15 = vmul.f32 %v3374_v12, %v3345_v38  ;;  %2611 = vpow2.f32 %v2320_v16  ;;  %vm1516_vm9 = vweird.f32 %v3374_v12 }
 0x1b4   :  { %v1508_v3 = vsel %vm1505_vm7, %v1507_v58, %v1503_v9  ;;  %2613 = vrcp.f32 %v1299_v27  ;;  %v1093_v18 = vpop.f32.mrf.mxu2  ;;  %v1142_v20 = vpop.f32.mrf.mxu3  ;;  %v1536_v55 = vand.u32 2147483648, %v1299_v27  ;;  %v1534_v63 = vand.u32 2147483647, %v1299_v27  ;;  %vm3407_vm11 = vmor %vm1515_vm8, %vm1516_vm9 }
 0x1b5   :  { %v2449_v35 = vpack.c.bf16 %v1508_v3, %v1493_v17  ;;  %v1512_v25 = vsub.f32 1.0, %v1511_v15  ;;  %v1094_v26 = vadd.f32 %v1093_v18, %v3148_v45  ;;  %v1143_v7 = vadd.f32 %v1142_v20, %v3309_v51 }
 0x1b6   :  { %vm1530_vm12 = vweird.f32 %v1299_v27  ;;  %v1522_v38 = vor.u32 1.1754944e-38, %v1521_v54  ;;  %v1537_v4 = vor.u32 1.1754944e-38, %v1536_v55  ;;  %vm1535_vm15 = vcmp.eq.f32.partialorder %v1534_v63, 8.507059e+37 }
 0x1b7   :  { %2533 = vst [vmem:[%s3730_s7 + $0x30] sm:$0xff] %v2449_v35   ;;  %v1192_v28 = vadd.f32 %v3348_v49, %v1094_v26  ;;  %v1193_v30 = vadd.f32 %v3353_v37, %v1143_v7  ;;  %v1513_v32 = vmul.f32 %v3374_v12, %v1512_v25 }
 0x1b9   :  { %v2612_v31 = vpop.eup %2611  ;;  %v2321_v34 = vmul.f32 -1.442695, %v1192_v28  ;;  %1957 = vst [vmem:[%s3731_s9 + $0x8] sm:$0xff] %v1193_v30  ;;  %v1514_v48 = vadd.f32 %v3374_v12, %v1513_v32 }
 0x1ba   :  { %v2614_v40 = vpop.eup %2613  ;;  %v3391_v41 = vadd.f32 1.0, %v2612_v31 }
 0x1bb   :  { %v1526_v45 = vmul.f32 %v2614_v40, %v1299_v27  ;;  %2615 = vpow2.f32 %v2321_v34  ;;  %vm1531_vm10 = vweird.f32 %v2614_v40 }
 0x1bc   :  { %2617 = vrcp.f32 %v3391_v41  ;;  %v1096_v51 = vpop.f32.mrf.mxu2  ;;  %v1145_v43 = vpop.f32.mrf.mxu3  ;;  %vm1532_vm14 = vmor %vm1530_vm12, %vm1531_vm10  ;;  %v1615_v31 = vand.u32 2147483648, %v3391_v41  ;;  %vm1609_vm1 = vweird.f32 %v3391_v41 }
 0x1bd   :  { %v1527_v59 = vsub.f32 1.0, %v1526_v45  ;;  %v1097_v11 = vadd.f32 %v1096_v51, %v3153_v53  ;;  %v1146_v61 = vadd.f32 %v1145_v43, %v3334_v24  ;;  %v1518_v24 = vsel %vm3407_vm11, %v3374_v12, %v1514_v48  ;;  %v2457_v45 = vld [vmem:[%s3732_s3] sm:$0xff]  }
 0x1be   :  { %v1523_v12 = vsel %vm1520_vm13, %v1522_v38, %v1518_v24 }
 0x1bf   :  { %v1528_v62 = vmul.f32 %v2614_v40, %v1527_v59  ;;  %v1195_v47 = vadd.f32 %v3348_v49, %v1097_v11  ;;  %v1196_v53 = vadd.f32 %v3353_v37, %v1146_v61  ;;  %v1616_v61 = vor.u32 1.1754944e-38, %v1615_v31  ;;  %v2535_v31 = vld [vmem:[%s3732_s3 + $0x8] sm:$0xff]  }
 0x1c1   :  { %v2616_v33 = vpop.eup %2615  ;;  %v1529_v1 = vadd.f32 %v2614_v40, %v1528_v62  ;;  %v2322_v2 = vmul.f32 -1.442695, %v1195_v47  ;;  %1958 = vst [vmem:[%s3731_s9 + $0x10] sm:$0xff] %v1196_v53  ;;  %v2459_v62 = vunpack.c.h.bf16 %v2457_v45 }
 0x1c2   :  { %v3417_v39 = vpop.eup %2617  ;;  %v3419_v5 = vadd.f32 1.0, %v2616_v33 }
 0x1c3   :  { %v1533_v10 = vsel %vm1532_vm14, %v2614_v40, %v1529_v1  ;;  %v1605_v16 = vmul.f32 %v3417_v39, %v3391_v41  ;;  %2619 = vpow2.f32 %v2322_v2  ;;  %vm1610_vm0 = vweird.f32 %v3417_v39 }
 0x1c4   :  { %v1538_v14 = vsel %vm1535_vm15, %v1537_v4, %v1533_v10  ;;  %2621 = vrcp.f32 %v3419_v5  ;;  %v1098_v58 = vpop.f32.mrf.mxu2  ;;  %v1147_v27 = vpop.f32.mrf.mxu3  ;;  %v1613_v40 = vand.u32 2147483647, %v3391_v41  ;;  %vm3453_vm2 = vmor %vm1609_vm1, %vm1610_vm0  ;;  %v1628_v59 = vand.u32 2147483647, %v3419_v5 }
 0x1c5   :  { %v2454_v9 = vpack.c.bf16 %v1538_v14, %v1523_v12  ;;  %v1606_v15 = vsub.f32 1.0, %v1605_v16  ;;  %v1099_v17 = vadd.f32 %v1098_v58, %v3156_v0  ;;  %v1148_v3 = vadd.f32 %v1147_v27, %v3355_v52  ;;  %v3440_v0 = vpop.f32.mrf.mxu0 }
 0x1c6   :  { %v1630_v11 = vand.u32 2147483648, %v3419_v5  ;;  %vm1614_vm4 = vcmp.eq.f32.partialorder %v1613_v40, 8.507059e+37  ;;  %vm1624_vm5 = vweird.f32 %v3419_v5  ;;  %vm1629_vm7 = vcmp.eq.f32.partialorder %v1628_v59, 8.507059e+37 }
 0x1c7   :  { %2534 = vst [vmem:[%s3730_s7 + $0x38] sm:$0xff] %v2454_v9   ;;  %v1607_v18 = vmul.f32 %v3417_v39, %v1606_v15  ;;  %v1198_v20 = vadd.f32 %v3348_v49, %v1099_v17  ;;  %v1199_v35 = vadd.f32 %v3353_v37, %v1148_v3 }
 0x1c8   :  { %v1631_v24 = vor.u32 1.1754944e-38, %v1630_v11 }
 0x1c9   :  { %v2620_v25 = vpop.eup %2619  ;;  %v2323_v26 = vmul.f32 -1.442695, %v1198_v20  ;;  %1959 = vst [vmem:[%s3731_s9 + $0x18] sm:$0xff] %v1199_v35  ;;  %v1608_v52 = vadd.f32 %v3417_v39, %v1607_v18 }
 0x1ca   :  { %v2622_v7 = vpop.eup %2621  ;;  %v3435_v28 = vadd.f32 1.0, %v2620_v25 }
 0x1cb   :  { %v1620_v30 = vmul.f32 %v2622_v7, %v3419_v5  ;;  %2623 = vpow2.f32 %v2323_v26  ;;  %v1612_v41 = vsel %vm3453_vm2, %v3417_v39, %v1608_v52  ;;  %vm1625_vm3 = vweird.f32 %v2622_v7 }
 0x1cc   :  { %2625 = vrcp.f32 %v3435_v28  ;;  %v1101_v32 = vpop.f32.mrf.mxu2  ;;  %v1150_v34 = vpop.f32.mrf.mxu3  ;;  %v1617_v33 = vsel %vm1614_vm4, %v1616_v61, %v1612_v41  ;;  %vm1626_vm6 = vmor %vm1624_vm5, %vm1625_vm3  ;;  %v1645_v26 = vand.u32 2147483648, %v3435_v28  ;;  %vm1639_vm9 = vweird.f32 %v3435_v28 }
 0x1cd   :  { %v1621_v51 = vsub.f32 1.0, %v1620_v30  ;;  %v1102_v43 = vadd.f32 %v1101_v32, %v3164_v13  ;;  %v1151_v50 = vadd.f32 %v1150_v34, %v3383_v19  ;;  %v2458_v13 = vunpack.c.l.bf16 %v2457_v45  ;;  %v3476_v10 = vpop.f32.mrf.mxu0 }
 0x1ce   :  { %v1643_v30 = vand.u32 2147483647, %v3435_v28  ;;  %v2463_v41 = vunpack.c.h.bf16 %v2535_v31 }
 0x1cf   :  { %v1622_v54 = vmul.f32 %v2622_v7, %v1621_v51  ;;  %v1201_v55 = vadd.f32 %v3348_v49, %v1102_v43  ;;  %v1202_v63 = vadd.f32 %v3353_v37, %v1151_v50  ;;  %v1908_v16 = vmul.f32 %v2458_v13, %v1617_v33 }
 0x1d0   :  { %v2462_v50 = vunpack.c.l.bf16 %v2535_v31  ;;  %vm1644_vm12 = vcmp.eq.f32.partialorder %v1643_v30, 8.507059e+37 }
 0x1d1   :  { %v2624_v47 = vpop.eup %2623  ;;  %v1623_v23 = vadd.f32 %v2622_v7, %v1622_v54  ;;  %v2324_v53 = vmul.f32 -1.442695, %v1201_v55  ;;  %1960 = vst [vmem:[%s3731_s9 + $0x20] sm:$0xff] %v1202_v63 }
 0x1d2   :  { %v3466_v19 = vpop.eup %2625  ;;  %v3468_v1 = vadd.f32 1.0, %v2624_v47 }
 0x1d3   :  { %v1627_v2 = vsel %vm1626_vm6, %v2622_v7, %v1623_v23  ;;  %v1635_v39 = vmul.f32 %v3466_v19, %v3435_v28  ;;  %2627 = vpow2.f32 %v2324_v53  ;;  %vm1640_vm8 = vweird.f32 %v3466_v19 }
 0x1d4   :  { %v1632_v38 = vsel %vm1629_vm7, %v1631_v24, %v1627_v2  ;;  %2629 = vrcp.f32 %v3468_v1  ;;  %v1103_v4 = vpop.f32.mrf.mxu2  ;;  %v1152_v5 = vpop.f32.mrf.mxu3  ;;  %vm3502_vm10 = vmor %vm1639_vm9, %vm1640_vm8  ;;  %v1658_v45 = vand.u32 2147483647, %v3468_v1  ;;  %v1660_v51 = vand.u32 2147483648, %v3468_v1 }
 0x1d5   :  { %v1909_v12 = vmul.f32 %v2459_v62, %v1632_v38  ;;  %v1636_v14 = vsub.f32 1.0, %v1635_v39  ;;  %v1104_v58 = vadd.f32 %v1103_v4, %v3177_v44  ;;  %v1153_v27 = vadd.f32 %v1152_v5, %v3412_v36  ;;  %v885_v48 = vpop.f32.mrf.mxu0 }
 0x1d6   :  { %vm1654_vm13 = vweird.f32 %v3468_v1  ;;  %v1661_v63 = vor.u32 1.1754944e-38, %v1660_v51  ;;  %vm1659_vm15 = vcmp.eq.f32.partialorder %v1658_v45, 8.507059e+37 }
 0x1d7   :  { %v2491_v9 = vpack.c.bf16 %v1909_v12, %v1908_v16  ;;  %v1637_v15 = vmul.f32 %v3466_v19, %v1636_v14  ;;  %v1204_v17 = vadd.f32 %v3348_v49, %v1104_v58  ;;  %v1205_v3 = vadd.f32 %v3353_v37, %v1153_v27 }
 0x1d9   :  { %v2628_v18 = vpop.eup %2627  ;;  %2492 = vst [vmem:[%s3733_s8] sm:$0xff] %v2491_v9   ;;  %v2325_v20 = vmul.f32 -1.442695, %v1204_v17  ;;  %v1638_v44 = vadd.f32 %v3466_v19, %v1637_v15 }
 0x1da   :  { %v2630_v35 = vpop.eup %2629  ;;  %v3486_v25 = vadd.f32 1.0, %v2628_v18  ;;  %1961 = vst [vmem:[%s3731_s9 + $0x28] sm:$0xff] %v1205_v3 }
 0x1db   :  { %v1650_v36 = vmul.f32 %v2630_v35, %v3468_v1  ;;  %2631 = vpow2.f32 %v2325_v20  ;;  %v1642_v28 = vsel %vm3502_vm10, %v3466_v19, %v1638_v44  ;;  %vm1655_vm11 = vweird.f32 %v2630_v35  ;;  %v2536_v44 = vld [vmem:[%s3732_s3 + $0x10] sm:$0xff]  }
 0x1dc   :  { %2633 = vrcp.f32 %v3486_v25  ;;  %v1106_v7 = vpop.f32.mrf.mxu2  ;;  %v1155_v52 = vpop.f32.mrf.mxu3  ;;  %vm1656_vm14 = vmor %vm1654_vm13, %vm1655_vm11  ;;  %v1675_v3 = vand.u32 2147483648, %v3486_v25  ;;  %vm1669_vm1 = vweird.f32 %v3486_v25  ;;  %v2466_v45 = vunpack.c.l.bf16 %v2536_v44 }
 0x1dd   :  { %v1651_v32 = vsub.f32 1.0, %v1650_v36  ;;  %v1107_v34 = vadd.f32 %v1106_v7, %v3189_v60  ;;  %v1156_v43 = vadd.f32 %v1155_v52, %v3440_v0  ;;  %v1646_v60 = vor.u32 1.1754944e-38, %v1645_v26  ;;  %v887_v27 = vpop.f32.mrf.mxu0 }
 0x1de   :  { %v1676_v40 = vor.u32 1.1754944e-38, %v1675_v3 }
 0x1df   :  { %v1652_v59 = vmul.f32 %v2630_v35, %v1651_v32  ;;  %v1207_v11 = vadd.f32 %v3348_v49, %v1107_v34  ;;  %v1208_v54 = vadd.f32 %v3353_v37, %v1156_v43  ;;  %v1647_v62 = vsel %vm1644_vm12, %v1646_v60, %v1642_v28 }
 0x1e0   :  { %v1910_v1 = vmul.f32 %v2462_v50, %v1647_v62 }
 0x1e1   :  { %v2632_v55 = vpop.eup %2631  ;;  %v1653_v61 = vadd.f32 %v2630_v35, %v1652_v59  ;;  %v2326_v0 = vmul.f32 -1.442695, %v1207_v11  ;;  %1962 = vst [vmem:[%s3731_s9 + $0x30] sm:$0xff] %v1208_v54 }
 0x1e2   :  { %v3515_v13 = vpop.eup %2633  ;;  %v3517_v47 = vadd.f32 1.0, %v2632_v55 }
 0x1e3   :  { %v1657_v23 = vsel %vm1656_vm14, %v2630_v35, %v1653_v61  ;;  %v1665_v53 = vmul.f32 %v3515_v13, %v3486_v25  ;;  %2635 = vpow2.f32 %v2326_v0  ;;  %vm1670_vm0 = vweird.f32 %v3515_v13 }
 0x1e4   :  { %v1662_v19 = vsel %vm1659_vm15, %v1661_v63, %v1657_v23  ;;  %2637 = vrcp.f32 %v3517_v47  ;;  %v1108_v33 = vpop.f32.mrf.mxu2  ;;  %v1157_v24 = vpop.f32.mrf.mxu3  ;;  %v1673_v35 = vand.u32 2147483647, %v3486_v25  ;;  %vm3549_vm2 = vmor %vm1669_vm1, %vm1670_vm0  ;;  %v1688_v52 = vand.u32 2147483647, %v3517_v47 }
 0x1e5   :  { %v1911_v2 = vmul.f32 %v2463_v41, %v1662_v19  ;;  %v1666_v39 = vsub.f32 1.0, %v1665_v53  ;;  %v1109_v38 = vadd.f32 %v1108_v33, %v3208_v22  ;;  %v1158_v4 = vadd.f32 %v1157_v24, %v3476_v10  ;;  %v890_v41 = vpop.f32.mrf.mxu0 }
 0x1e6   :  { %v1690_v30 = vand.u32 2147483648, %v3517_v47  ;;  %vm1674_vm4 = vcmp.eq.f32.partialorder %v1673_v35, 8.507059e+37  ;;  %vm1684_vm5 = vweird.f32 %v3517_v47  ;;  %vm1689_vm7 = vcmp.eq.f32.partialorder %v1688_v52, 8.507059e+37 }
 0x1e7   :  { %v2496_v5 = vpack.c.bf16 %v1911_v2, %v1910_v1  ;;  %v1667_v16 = vmul.f32 %v3515_v13, %v1666_v39  ;;  %v1210_v12 = vadd.f32 %v3348_v49, %v1109_v38  ;;  %v1211_v14 = vadd.f32 %v3353_v37, %v1158_v4 }
 0x1e8   :  { %v1691_v60 = vor.u32 1.1754944e-38, %v1690_v30 }
 0x1e9   :  { %v2636_v58 = vpop.eup %2635  ;;  %2542 = vst [vmem:[%s3733_s8 + $0x8] sm:$0xff] %v2496_v5   ;;  %v2327_v9 = vmul.f32 -1.442695, %v1210_v12  ;;  %v1668_v22 = vadd.f32 %v3515_v13, %v1667_v16 }
 0x1ea   :  { %v2638_v15 = vpop.eup %2637  ;;  %v3533_v17 = vadd.f32 1.0, %v2636_v58  ;;  %1963 = vst [vmem:[%s3731_s9 + $0x38] sm:$0xff] %v1211_v14 }
 0x1eb   :  { %v1680_v10 = vmul.f32 %v2638_v15, %v3517_v47  ;;  %2639 = vpow2.f32 %v2327_v9  ;;  %v1672_v25 = vsel %vm3549_vm2, %v3515_v13, %v1668_v22  ;;  %vm1685_vm3 = vweird.f32 %v2638_v15  ;;  %v2537_v9 = vld [vmem:[%s3732_s3 + $0x18] sm:$0xff]  }
 0x1ec   :  { %2641 = vrcp.f32 %v3533_v17  ;;  %v1111_v18 = vpop.f32.mrf.mxu2  ;;  %v1160_v20 = vpop.f32.mrf.mxu3  ;;  %v1677_v11 = vsel %vm1674_vm4, %v1676_v40, %v1672_v25  ;;  %vm1686_vm6 = vmor %vm1684_vm5, %vm1685_vm3  ;;  %v1705_v16 = vand.u32 2147483648, %v3533_v17  ;;  %vm1699_vm9 = vweird.f32 %v3533_v17 }
 0x1ed   :  { %v1681_v36 = vsub.f32 1.0, %v1680_v10  ;;  %v1112_v26 = vadd.f32 %v1111_v18, %v3220_v42  ;;  %v1161_v31 = vadd.f32 %v1160_v20, %v885_v48  ;;  %v2467_v42 = vunpack.c.h.bf16 %v2536_v44  ;;  %v892_v58 = vpop.f32.mrf.mxu0 }
 0x1ee   :  { %v1912_v62 = vmul.f32 %v2466_v45, %v1677_v11 }
 0x1ef   :  { %v1682_v32 = vmul.f32 %v2638_v15, %v1681_v36  ;;  %v1213_v34 = vadd.f32 %v3348_v49, %v1112_v26  ;;  %v1214_v51 = vadd.f32 %v3353_v37, %v1161_v31  ;;  %v1706_v36 = vor.u32 1.1754944e-38, %v1705_v16 }
 0x1f0   :  { %v2470_v26 = vunpack.c.l.bf16 %v2537_v9 }
 0x1f1   :  { %v2640_v43 = vpop.eup %2639  ;;  %v1683_v28 = vadd.f32 %v2638_v15, %v1682_v32  ;;  %v2328_v59 = vmul.f32 -1.442695, %v1213_v34  ;;  %1964 = vst [vmem:[%s3731_s9 + $0x40] sm:$0xff] %v1214_v51 }
 0x1f2   :  { %v3561_v48 = vpop.eup %2641  ;;  %v3563_v50 = vadd.f32 1.0, %v2640_v43 }
 0x1f3   :  { %v1687_v54 = vsel %vm1686_vm6, %v2638_v15, %v1683_v28  ;;  %v1695_v55 = vmul.f32 %v3561_v48, %v3533_v17  ;;  %2643 = vpow2.f32 %v2328_v59  ;;  %vm1700_vm8 = vweird.f32 %v3561_v48 }
 0x1f4   :  { %v1692_v61 = vsel %vm1689_vm7, %v1691_v60, %v1687_v54  ;;  %2645 = vrcp.f32 %v3563_v50  ;;  %v1113_v0 = vpop.f32.mrf.mxu2  ;;  %v1162_v13 = vpop.f32.mrf.mxu3  ;;  %vm3594_vm10 = vmor %vm1699_vm9, %vm1700_vm8  ;;  %v1718_v3 = vand.u32 2147483647, %v3563_v50  ;;  %v1720_v18 = vand.u32 2147483648, %v3563_v50 }
 0x1f5   :  { %v1913_v63 = vmul.f32 %v2467_v42, %v1692_v61  ;;  %v1696_v47 = vsub.f32 1.0, %v1695_v55  ;;  %v1114_v23 = vadd.f32 %v1113_v0, %v3239_v6  ;;  %v1163_v53 = vadd.f32 %v1162_v13, %v887_v27 }
 0x1f6   :  { %v1703_v27 = vand.u32 2147483647, %v3533_v17  ;;  %vm1714_vm13 = vweird.f32 %v3563_v50  ;;  %v1721_v34 = vor.u32 1.1754944e-38, %v1720_v18  ;;  %vm1719_vm15 = vcmp.eq.f32.partialorder %v1718_v3, 8.507059e+37 }
 0x1f7   :  { %v2501_v19 = vpack.c.bf16 %v1913_v63, %v1912_v62  ;;  %v1697_v33 = vmul.f32 %v3561_v48, %v1696_v47  ;;  %v1216_v24 = vadd.f32 %v3348_v49, %v1114_v23  ;;  %v1217_v1 = vadd.f32 %v3353_v37, %v1163_v53 }
 0x1f8   :  { %vm1704_vm12 = vcmp.eq.f32.partialorder %v1703_v27, 8.507059e+37 }
 0x1f9   :  { %v2644_v2 = vpop.eup %2643  ;;  %2543 = vst [vmem:[%s3733_s8 + $0x10] sm:$0xff] %v2501_v19   ;;  %v2329_v39 = vmul.f32 -1.442695, %v1216_v24  ;;  %v1698_v6 = vadd.f32 %v3561_v48, %v1697_v33 }
 0x1fa   :  { %v2646_v38 = vpop.eup %2645  ;;  %v3578_v4 = vadd.f32 1.0, %v2644_v2  ;;  %1965 = vst [vmem:[%s3731_s9 + $0x48] sm:$0xff] %v1217_v1  ;;  %v2538_v1 = vld [vmem:[%s3732_s3 + $0x20] sm:$0xff]  }
 0x1fb   :  { %v1710_v5 = vmul.f32 %v2646_v38, %v3563_v50  ;;  %2647 = vpow2.f32 %v2329_v39  ;;  %v1702_v17 = vsel %vm3594_vm10, %v3561_v48, %v1698_v6  ;;  %vm1715_vm11 = vweird.f32 %v2646_v38 }
 0x1fc   :  { %2649 = vrcp.f32 %v3578_v4  ;;  %v1116_v12 = vpop.f32.mrf.mxu2  ;;  %v1165_v14 = vpop.f32.mrf.mxu3  ;;  %v1707_v32 = vsel %vm1704_vm12, %v1706_v36, %v1702_v17  ;;  %vm1716_vm14 = vmor %vm1714_vm13, %vm1715_vm11  ;;  %v1735_v53 = vand.u32 2147483648, %v3578_v4  ;;  %vm1729_vm1 = vweird.f32 %v3578_v4 }
 0x1fd   :  { %v1711_v15 = vsub.f32 1.0, %v1710_v5  ;;  %v1117_v22 = vadd.f32 %v1116_v12, %v3251_v21  ;;  %v1166_v20 = vadd.f32 %v1165_v14, %v890_v41  ;;  %v2471_v21 = vunpack.c.h.bf16 %v2537_v9  ;;  %v895_v41 = vpop.f32.mrf.mxu0 }
 0x1fe   :  { %v1914_v59 = vmul.f32 %v2470_v26, %v1707_v32  ;;  %v1733_v24 = vand.u32 2147483647, %v3578_v4  ;;  %v2474_v27 = vunpack.c.l.bf16 %v2538_v1 }
 0x1ff   :  { %v1712_v35 = vmul.f32 %v2646_v38, %v1711_v15  ;;  %v1219_v44 = vadd.f32 %v3348_v49, %v1117_v22  ;;  %v1220_v7 = vadd.f32 %v3353_v37, %v1166_v20 }
 0x200   :  { %vm1734_vm4 = vcmp.eq.f32.partialorder %v1733_v24, 8.507059e+37 }
 0x201   :  { %v2648_v52 = vpop.eup %2647  ;;  %v1713_v30 = vadd.f32 %v2646_v38, %v1712_v35  ;;  %v2330_v31 = vmul.f32 -1.442695, %v1219_v44  ;;  %1966 = vst [vmem:[%s3731_s9 + $0x50] sm:$0xff] %v1220_v7 }
 0x202   :  { %v3606_v25 = vpop.eup %2649  ;;  %v3608_v40 = vadd.f32 1.0, %v2648_v52 }
 0x203   :  { %v1717_v45 = vsel %vm1716_vm14, %v2646_v38, %v1713_v30  ;;  %v1725_v42 = vmul.f32 %v3606_v25, %v3578_v4  ;;  %2651 = vpow2.f32 %v2330_v31  ;;  %vm1730_vm0 = vweird.f32 %v3606_v25 }
 0x204   :  { %v1722_v51 = vsel %vm1719_vm15, %v1721_v34, %v1717_v45  ;;  %2653 = vrcp.f32 %v3608_v40  ;;  %v1118_v43 = vpop.f32.mrf.mxu2  ;;  %v1167_v28 = vpop.f32.mrf.mxu3  ;;  %vm3639_vm2 = vmor %vm1729_vm1, %vm1730_vm0  ;;  %v1748_v6 = vand.u32 2147483647, %v3608_v40  ;;  %v1750_v5 = vand.u32 2147483648, %v3608_v40 }
 0x205   :  { %v1915_v48 = vmul.f32 %v2471_v21, %v1722_v51  ;;  %v1726_v11 = vsub.f32 1.0, %v1725_v42  ;;  %v1119_v60 = vadd.f32 %v1118_v43, %v3270_v57  ;;  %v1168_v50 = vadd.f32 %v1167_v28, %v892_v58  ;;  %v897_v22 = vpop.f32.mrf.mxu0 }
 0x206   :  { %v1736_v58 = vor.u32 1.1754944e-38, %v1735_v53  ;;  %vm1744_vm5 = vweird.f32 %v3608_v40  ;;  %v1751_v17 = vor.u32 1.1754944e-38, %v1750_v5  ;;  %vm1749_vm7 = vcmp.eq.f32.partialorder %v1748_v6, 8.507059e+37 }
 0x207   :  { %v2506_v54 = vpack.c.bf16 %v1915_v48, %v1914_v59  ;;  %v1727_v55 = vmul.f32 %v3606_v25, %v1726_v11  ;;  %v1222_v61 = vadd.f32 %v3348_v49, %v1119_v60  ;;  %v1223_v0 = vadd.f32 %v3353_v37, %v1168_v50 }
 0x209   :  { %v2652_v13 = vpop.eup %2651  ;;  %2544 = vst [vmem:[%s3733_s8 + $0x18] sm:$0xff] %v2506_v54   ;;  %v2331_v62 = vmul.f32 -1.442695, %v1222_v61  ;;  %v1728_v57 = vadd.f32 %v3606_v25, %v1727_v55  ;;  %v2539_v55 = vld [vmem:[%s3732_s3 + $0x28] sm:$0xff]  }
 0x20a   :  { %v2654_v63 = vpop.eup %2653  ;;  %v3623_v47 = vadd.f32 1.0, %v2652_v13  ;;  %1967 = vst [vmem:[%s3731_s9 + $0x58] sm:$0xff] %v1223_v0 }
 0x20b   :  { %v1740_v23 = vmul.f32 %v2654_v63, %v3608_v40  ;;  %2655 = vpow2.f32 %v2331_v62  ;;  %v1732_v4 = vsel %vm3639_vm2, %v3606_v25, %v1728_v57  ;;  %vm1745_vm3 = vweird.f32 %v2654_v63 }
 0x20c   :  { %2657 = vrcp.f32 %v3623_v47  ;;  %v1121_v19 = vpop.f32.mrf.mxu2  ;;  %v1170_v33 = vpop.f32.mrf.mxu3  ;;  %v1737_v20 = vsel %vm1734_vm4, %v1736_v58, %v1732_v4  ;;  %vm1746_vm6 = vmor %vm1744_vm5, %vm1745_vm3  ;;  %v1765_v60 = vand.u32 2147483648, %v3623_v47  ;;  %vm1759_vm9 = vweird.f32 %v3623_v47 }
 0x20d   :  { %v1741_v2 = vsub.f32 1.0, %v1740_v23  ;;  %v1122_v39 = vadd.f32 %v1121_v19, %v3282_v8  ;;  %v1171_v16 = vadd.f32 %v1170_v33, %v895_v41  ;;  %v2475_v8 = vunpack.c.h.bf16 %v2538_v1 }
 0x20e   :  { %v1916_v52 = vmul.f32 %v2474_v27, %v1737_v20  ;;  %v1763_v54 = vand.u32 2147483647, %v3623_v47  ;;  %v1766_v19 = vor.u32 1.1754944e-38, %v1765_v60  ;;  %v2478_v33 = vunpack.c.l.bf16 %v2539_v55 }
 0x20f   :  { %v1742_v12 = vmul.f32 %v2654_v63, %v1741_v2  ;;  %v1225_v14 = vadd.f32 %v3348_v49, %v1122_v39  ;;  %v1226_v9 = vadd.f32 %v3353_v37, %v1171_v16 }
 0x210   :  { %vm1764_vm12 = vcmp.eq.f32.partialorder %v1763_v54, 8.507059e+37 }
 0x211   :  { %v2656_v15 = vpop.eup %2655  ;;  %v1743_v10 = vadd.f32 %v2654_v63, %v1742_v12  ;;  %v2332_v3 = vmul.f32 -1.442695, %v1225_v14  ;;  %1968 = vst [vmem:[%s3731_s9 + $0x60] sm:$0xff] %v1226_v9 }
 0x212   :  { %v3651_v18 = vpop.eup %2657  ;;  %v3653_v35 = vadd.f32 1.0, %v2656_v15 }
 0x213   :  { %v1747_v44 = vsel %vm1746_vm6, %v2654_v63, %v1743_v10  ;;  %v1755_v36 = vmul.f32 %v3651_v18, %v3623_v47  ;;  %2659 = vpow2.f32 %v2332_v3  ;;  %vm1760_vm8 = vweird.f32 %v3651_v18 }
 0x214   :  { %v1752_v26 = vsel %vm1749_vm7, %v1751_v17, %v1747_v44  ;;  %2661 = vrcp.f32 %v3653_v35  ;;  %v1123_v21 = vpop.f32.mrf.mxu2  ;;  %v1172_v7 = vpop.f32.mrf.mxu3  ;;  %vm3684_vm10 = vmor %vm1759_vm9, %vm1760_vm8  ;;  %v1778_v62 = vand.u32 2147483647, %v3653_v35  ;;  %v1780_v63 = vand.u32 2147483648, %v3653_v35 }
 0x215   :  { %v1917_v30 = vmul.f32 %v2475_v8, %v1752_v26  ;;  %v1756_v31 = vsub.f32 1.0, %v1755_v36  ;;  %v1124_v25 = vadd.f32 %v1123_v21, %v3303_v46  ;;  %v1173_v32 = vadd.f32 %v1172_v7, %v897_v22  ;;  %v900_v46 = vpop.f32.mrf.mxu0 }
 0x216   :  { %vm1774_vm13 = vweird.f32 %v3653_v35  ;;  %v1781_v5 = vor.u32 1.1754944e-38, %v1780_v63  ;;  %vm1779_vm15 = vcmp.eq.f32.partialorder %v1778_v62, 8.507059e+37 }
 0x217   :  { %v2511_v34 = vpack.c.bf16 %v1917_v30, %v1916_v52  ;;  %v1757_v40 = vmul.f32 %v3651_v18, %v1756_v31  ;;  %v1228_v45 = vadd.f32 %v3348_v49, %v1124_v25  ;;  %v1229_v42 = vadd.f32 %v3353_v37, %v1173_v32  ;;  %v2540_v52 = vld [vmem:[%s3732_s3 + $0x30] sm:$0xff]  }
 0x219   :  { %v2660_v51 = vpop.eup %2659  ;;  %2545 = vst [vmem:[%s3733_s8 + $0x20] sm:$0xff] %v2511_v34   ;;  %v2333_v43 = vmul.f32 -1.442695, %v1228_v45  ;;  %v1758_v48 = vadd.f32 %v3651_v18, %v1757_v40  ;;  %v2482_v45 = vunpack.c.l.bf16 %v2540_v52 }
 0x21a   :  { %v2662_v28 = vpop.eup %2661  ;;  %v3668_v59 = vadd.f32 1.0, %v2660_v51  ;;  %1969 = vst [vmem:[%s3731_s9 + $0x68] sm:$0xff] %v1229_v42 }
 0x21b   :  { %v1770_v11 = vmul.f32 %v2662_v28, %v3653_v35  ;;  %2663 = vpow2.f32 %v2333_v43  ;;  %v1762_v47 = vsel %vm3684_vm10, %v3651_v18, %v1758_v48  ;;  %vm1775_vm11 = vweird.f32 %v2662_v28 }
 0x21c   :  { %2665 = vrcp.f32 %v3668_v59  ;;  %v1126_v50 = vpop.f32.mrf.mxu2  ;;  %v1175_v41 = vpop.f32.mrf.mxu3  ;;  %v1767_v6 = vsel %vm1764_vm12, %v1766_v19, %v1762_v47  ;;  %vm1776_vm14 = vmor %vm1774_vm13, %vm1775_vm11  ;;  %vm1789_vm1 = vweird.f32 %v3668_v59  ;;  %v2483_v43 = vunpack.c.h.bf16 %v2540_v52 }
 0x21d   :  { %v1771_v61 = vsub.f32 1.0, %v1770_v11  ;;  %v1127_v0 = vadd.f32 %v1126_v50, %v3317_v56  ;;  %v1176_v57 = vadd.f32 %v1175_v41, %v900_v46  ;;  %v2479_v56 = vunpack.c.h.bf16 %v2539_v55  ;;  %v902_v8 = vpop.f32.mrf.mxu0 }
 0x21e   :  { %v1918_v9 = vmul.f32 %v2478_v33, %v1767_v6 }
 0x21f   :  { %v1772_v23 = vmul.f32 %v2662_v28, %v1771_v61  ;;  %v1231_v53 = vadd.f32 %v3348_v49, %v1127_v0  ;;  %v1232_v24 = vadd.f32 %v3353_v37, %v1176_v57 }
 0x221   :  { %v2664_v1 = vpop.eup %2663  ;;  %v1773_v2 = vadd.f32 %v2662_v28, %v1772_v23  ;;  %v2334_v39 = vmul.f32 -1.442695, %v1231_v53  ;;  %1970 = vst [vmem:[%s3731_s9 + $0x70] sm:$0xff] %v1232_v24  ;;  %v2541_v23 = vld [vmem:[%s3732_s3 + $0x38] sm:$0xff]  }
 0x222   :  { %v2666_v38 = vpop.eup %2665  ;;  %v1601_v16 = vadd.f32 1.0, %v2664_v1 }
 0x223   :  { %v1777_v4 = vsel %vm1776_vm14, %v2662_v28, %v1773_v2  ;;  %v1785_v12 = vmul.f32 %v2666_v38, %v3668_v59  ;;  %2667 = vpow2.f32 %v2334_v39  ;;  %vm1790_vm0 = vweird.f32 %v2666_v38 }
 0x224   :  { %v1782_v14 = vsel %vm1779_vm15, %v1781_v5, %v1777_v4  ;;  %2669 = vrcp.f32 %v1601_v16  ;;  %v1128_v58 = vpop.f32.mrf.mxu2  ;;  %v1177_v27 = vpop.f32.mrf.mxu3  ;;  %vm1791_vm2 = vmor %vm1789_vm1, %vm1790_vm0  ;;  %v1810_v31 = vand.u32 2147483648, %v1601_v16  ;;  %v1808_v34 = vand.u32 2147483647, %v1601_v16 }
 0x225   :  { %v1919_v15 = vmul.f32 %v2479_v56, %v1782_v14  ;;  %v1786_v22 = vsub.f32 1.0, %v1785_v12  ;;  %v1129_v10 = vadd.f32 %v1128_v58, %v3338_v29  ;;  %v1178_v3 = vadd.f32 %v1177_v27, %v902_v8 }
 0x226   :  { %vm1804_vm5 = vweird.f32 %v1601_v16  ;;  %v1811_v46 = vor.u32 1.1754944e-38, %v1810_v31  ;;  %vm1809_vm7 = vcmp.eq.f32.partialorder %v1808_v34, 8.507059e+37  ;;  %v2486_v2 = vunpack.c.l.bf16 %v2541_v23 }
 0x227   :  { %v2516_v18 = vpack.c.bf16 %v1919_v15, %v1918_v9  ;;  %v1787_v20 = vmul.f32 %v2666_v38, %v1786_v22  ;;  %v1234_v17 = vadd.f32 %v3348_v49, %v1129_v10  ;;  %v1235_v35 = vadd.f32 %v3353_v37, %v1178_v3 }
 0x228   :  { %v1795_v49 = vand.u32 2147483648, %v3668_v59  ;;  %v1793_v37 = vand.u32 2147483647, %v3668_v59 }
 0x229   :  { %v2668_v44 = vpop.eup %2667  ;;  %2546 = vst [vmem:[%s3733_s8 + $0x28] sm:$0xff] %v2516_v18   ;;  %v2335_v36 = vmul.f32 -1.442695, %v1234_v17  ;;  %v1788_v29 = vadd.f32 %v2666_v38, %v1787_v20 }
 0x22a   :  { %v2670_v26 = vpop.eup %2669  ;;  %v1602_v21 = vadd.f32 1.0, %v2668_v44  ;;  %1971 = vst [vmem:[%s3731_s9 + $0x78] sm:$0xff] %v1235_v35  ;;  %v1796_v40 = vor.u32 1.1754944e-38, %v1795_v49  ;;  %vm1794_vm4 = vcmp.eq.f32.partialorder %v1793_v37, 8.507059e+37 }
 0x22b   :  { %v1800_v7 = vmul.f32 %v2670_v26, %v1601_v16  ;;  %2671 = vpow2.f32 %v2335_v36  ;;  %v1792_v25 = vsel %vm1791_vm2, %v2666_v38, %v1788_v29  ;;  %vm1805_vm3 = vweird.f32 %v2670_v26 }
 0x22c   :  { %2673 = vrcp.f32 %v1602_v21  ;;  %v1797_v59 = vsel %vm1794_vm4, %v1796_v40, %v1792_v25  ;;  %vm1806_vm6 = vmor %vm1804_vm5, %vm1805_vm3  ;;  %v1825_v57 = vand.u32 2147483648, %v1602_v21  ;;  %vm1819_vm9 = vweird.f32 %v1602_v21 }
 0x22d   :  { %v1801_v30 = vsub.f32 1.0, %v1800_v7  ;;  %v1920_v41 = vmul.f32 %v2482_v45, %v1797_v59  ;;  %v1823_v47 = vand.u32 2147483647, %v1602_v21  ;;  %v2487_v38 = vunpack.c.h.bf16 %v2541_v23 }
 0x22e   :  { %v1826_v1 = vor.u32 1.1754944e-38, %v1825_v57 }
 0x22f   :  { %v1802_v32 = vmul.f32 %v2670_v26, %v1801_v30  ;;  %vm1824_vm12 = vcmp.eq.f32.partialorder %v1823_v47, 8.507059e+37 }
 0x231   :  { %v2672_v42 = vpop.eup %2671  ;;  %v1803_v51 = vadd.f32 %v2670_v26, %v1802_v32 }
 0x232   :  { %v2674_v28 = vpop.eup %2673  ;;  %v1603_v48 = vadd.f32 1.0, %v2672_v42 }
 0x233   :  { %v1807_v11 = vsel %vm1806_vm6, %v2670_v26, %v1803_v51  ;;  %v1815_v60 = vmul.f32 %v2674_v28, %v1602_v21  ;;  %vm1820_vm8 = vweird.f32 %v2674_v28 }
 0x234   :  { %v1812_v50 = vsel %vm1809_vm7, %v1811_v46, %v1807_v11  ;;  %2675 = vrcp.f32 %v1603_v48  ;;  %vm1821_vm10 = vmor %vm1819_vm9, %vm1820_vm8  ;;  %v1840_v19 = vand.u32 2147483648, %v1603_v48  ;;  %v1838_v24 = vand.u32 2147483647, %v1603_v48 }
 0x235   :  { %v1921_v54 = vmul.f32 %v2483_v43, %v1812_v50  ;;  %v1816_v55 = vsub.f32 1.0, %v1815_v60  ;;  %vm1834_vm13 = vweird.f32 %v1603_v48 }
 0x236   :  { %v1841_v5 = vor.u32 1.1754944e-38, %v1840_v19  ;;  %vm1839_vm15 = vcmp.eq.f32.partialorder %v1838_v24, 8.507059e+37 }
 0x237   :  { %v2521_v61 = vpack.c.bf16 %v1921_v54, %v1920_v41  ;;  %v1817_v0 = vmul.f32 %v2674_v28, %v1816_v55 }
 0x239   :  { %2547 = vst [vmem:[%s3733_s8 + $0x30] sm:$0xff] %v2521_v61   ;;  %v1818_v62 = vadd.f32 %v2674_v28, %v1817_v0 }
 0x23a   :  { %v2676_v13 = vpop.eup %2675 }
 0x23b   :  { %v1830_v63 = vmul.f32 %v2676_v13, %v1603_v48  ;;  %v1822_v33 = vsel %vm1821_vm10, %v2674_v28, %v1818_v62  ;;  %vm1835_vm11 = vweird.f32 %v2676_v13 }
 0x23c   :  { %v1827_v6 = vsel %vm1824_vm12, %v1826_v1, %v1822_v33  ;;  %vm1836_vm14 = vmor %vm1834_vm13, %vm1835_vm11 }
 0x23d   :  { %v1831_v53 = vsub.f32 1.0, %v1830_v63  ;;  %v1922_v12 = vmul.f32 %v2486_v2, %v1827_v6 }
 0x23f   :  { %v1832_v56 = vmul.f32 %v2676_v13, %v1831_v53 }
 0x241   :  { %v1833_v39 = vadd.f32 %v2676_v13, %v1832_v56 }
 0x243   :  { %v1837_v16 = vsel %vm1836_vm14, %v2676_v13, %v1833_v39 }
 0x244   :  { %v1842_v4 = vsel %vm1839_vm15, %v1841_v5, %v1837_v16 }
 0x245   :  { %v1923_v14 = vmul.f32 %v2487_v38, %v1842_v4 }
 0x247   :  { %v2526_v58 = vpack.c.bf16 %v1923_v14, %v1922_v12 }
 0x249   :  { %2548 = vst [vmem:[%s3733_s8 + $0x38] sm:$0xff] %v2526_v58  }

</bundles_post_ra>
